<compile_context>
chip_gen: v5e
topology: v5e:2x2
jax: 0.10.0
libtpu: 0.0.40
codegen_flags: <defaults>
</compile_context>

<pallas_src>
import functools

import jax
import jax.numpy as jnp
from jax.experimental import pallas as pl
from jax.experimental.pallas import tpu as pltpu

_LN_EPS = 1e-5                     # torch.nn.LayerNorm default
_INV_SQRT2 = 0.7071067811865476


# ----------------------------------------------------------------------------
# In-kernel math helpers (elementwise / reductions only; all Mosaic-lowerable)
# ----------------------------------------------------------------------------
def _erf_approx(x):
    # Abramowitz & Stegun 7.1.26 (max abs err ~1.5e-7): exp/mul/add/where only.
    a1, a2, a3, a4, a5 = (0.254829592, -0.284496736, 1.421413741,
                          -1.453152027, 1.061405429)
    p = 0.3275911
    ax = jnp.abs(x)
    t = 1.0 / (1.0 + p * ax)
    poly = ((((a5 * t + a4) * t + a3) * t + a2) * t + a1) * t
    y = 1.0 - poly * jnp.exp(-ax * ax)
    return jnp.where(x >= 0.0, y, -y)


def _gelu_exact(x):
    # PyTorch nn.GELU() default = exact erf formulation.
    # TODO(synk): a tanh/EUP-based GELU would relieve VALU pressure on v5e but
    #             deviates slightly from the exact-erf PyTorch default.
    return 0.5 * x * (1.0 + _erf_approx(x * _INV_SQRT2))


def _layernorm(x, g, b):
    mu = jnp.mean(x, axis=-1, keepdims=True)
    xc = x - mu
    var = jnp.mean(xc * xc, axis=-1, keepdims=True)
    return xc * jax.lax.rsqrt(var + _LN_EPS) * g + b


# ----------------------------------------------------------------------------
# Per-(batch, layer) kernel body.  Grid = (B, depth); the activation for the
# current batch element lives in `act_ref` (VMEM f32) across the depth axis.
# ----------------------------------------------------------------------------
def _transformer_layer_kernel(x_ref, ln1g_ref, ln1b_ref, wq_ref, wk_ref, wv_ref,
                              wo_ref, bo_ref, ln2g_ref, ln2b_ref, w1_ref, b1_ref,
                              w2_ref, b2_ref, o_ref, act_ref, *, heads, scale):
    l = pl.program_id(1)

    @pl.when(l == 0)
    def _():                                   # seed the resident activation
        act_ref[...] = x_ref[...].astype(jnp.float32)

    x = act_ref[...]                           # (N, D) f32, resident in VMEM
    N, D = x.shape

    # ---------------- PreNorm + multi-head attention + residual ----------------
    xn = _layernorm(x, ln1g_ref[...], ln1b_ref[...])
    xn_b = jnp.broadcast_to(xn.astype(jnp.bfloat16), (heads, N, D))   # (H, N, D)

    # Head-major q/k/v via batched bf16 MXU matmuls (no lane slicing / reshapes).
    q = jnp.einsum('hnd,hdk->hnk', xn_b, wq_ref[...],
                   preferred_element_type=jnp.float32)                # (H, N, dh)
    k = jnp.einsum('hnd,hdk->hnk', xn_b, wk_ref[...],
                   preferred_element_type=jnp.float32)
    v = jnp.einsum('hnd,hdk->hnk', xn_b, wv_ref[...],
                   preferred_element_type=jnp.float32)

    s = jnp.einsum('hqd,hkd->hqk', q.astype(jnp.bfloat16), k.astype(jnp.bfloat16),
                   preferred_element_type=jnp.float32) * scale        # (H, N, N)
    s = s - jnp.max(s, axis=-1, keepdims=True)
    p = jnp.exp(s)
    p = p * pl.reciprocal(jnp.sum(p, axis=-1, keepdims=True), approx=True)

    ctx = jnp.einsum('hqk,hkd->hqd', p.astype(jnp.bfloat16), v.astype(jnp.bfloat16),
                     preferred_element_type=jnp.float32)               # (H, N, dh)
    # Output projection: one batched (H, N, dh) x (H, dh, D) matmul + head-sum
    # == the single (N, inner) @ (inner, D) projection, without any transposes.
    proj = jnp.einsum('hnd,hdo->hno', ctx.astype(jnp.bfloat16), wo_ref[...],
                      preferred_element_type=jnp.float32)              # (H, N, D)
    x = x + jnp.sum(proj, axis=0) + bo_ref[...]                        # residual

    # ---------------- PreNorm + FeedForward + residual ----------------
    xn = _layernorm(x, ln2g_ref[...], ln2b_ref[...])
    h = jnp.dot(xn.astype(jnp.bfloat16), w1_ref[...],
                preferred_element_type=jnp.float32) + b1_ref[...]
    h = _gelu_exact(h)
    ffo = jnp.dot(h.astype(jnp.bfloat16), w2_ref[...],
                  preferred_element_type=jnp.float32) + b2_ref[...]
    x = x + ffo                                                        # residual

    act_ref[...] = x

    @pl.when(l == pl.num_programs(1) - 1)
    def _():                                   # write this batch element once
        o_ref[...] = x.astype(o_ref.dtype)


# ----------------------------------------------------------------------------
# Module wrapper (parameters stacked per layer once, in __init__)
# ----------------------------------------------------------------------------
class TransformerPallas:
    """JAX/Pallas equivalent of the PyTorch `Transformer` (inference, dropout=0)."""

    def __init__(self, key, dim, depth, heads, dim_head, mlp_dim, dropout=0.0):
        # TODO(synk): dropout > 0 (training-mode RNG masking) not implemented;
        # the module default p=0.0 makes every nn.Dropout an identity.
        del dropout
        self.dim, self.depth = dim, depth
        self.heads, self.dim_head, self.mlp_dim = heads, dim_head, mlp_dim
        inner = heads * dim_head
        project_out = not (heads == 1 and dim_head == dim)

        def lin(k, fan_in, shape):
            return jax.random.normal(k, shape, jnp.float32) / jnp.sqrt(float(fan_in))

        wq, wk, wv, wo, bo, w1, b1, w2, b2 = ([] for _ in range(9))
        for kl in jax.random.split(key, depth):
            kq, kk, kv, ko, kf1, kf2 = jax.random.split(kl, 6)
            # to_qkv (bias=False), stored head-major: q_h = LN(x) @ wq[h]   (dim->dh)
            wq.append(lin(kq, dim, (heads, dim, dim_head)))
            wk.append(lin(kk, dim, (heads, dim, dim_head)))
            wv.append(lin(kv, dim, (heads, dim, dim_head)))
            if project_out:
                wo.append(lin(ko, inner, (inner, dim)).reshape(heads, dim_head, dim))
                bo.append(lin(jax.random.fold_in(ko, 1), inner, (1, dim)))
            else:  # nn.Identity (heads == 1 and dim_head == dim)
                wo.append(jnp.eye(inner, dim, dtype=jnp.float32)
                          .reshape(heads, dim_head, dim))
                bo.append(jnp.zeros((1, dim), jnp.float32))
            w1.append(lin(kf1, dim, (dim, mlp_dim)))
            b1.append(lin(jax.random.fold_in(kf1, 1), dim, (1, mlp_dim)))
            w2.append(lin(kf2, mlp_dim, (mlp_dim, dim)))
            b2.append(lin(jax.random.fold_in(kf2, 1), mlp_dim, (1, dim)))

        # LayerNorm affine params (PyTorch default: gamma=1, beta=0), kept f32.
        self.ln1_g = jnp.ones((depth, 1, dim), jnp.float32)
        self.ln1_b = jnp.zeros((depth, 1, dim), jnp.float32)
        self.ln2_g = jnp.ones((depth, 1, dim), jnp.float32)
        self.ln2_b = jnp.zeros((depth, 1, dim), jnp.float32)
        # MXU operands stored in bf16 (native MXU input dtype on v5e/v6e/v7x);
        # accumulation stays f32 inside the kernel.  Biases stay f32 (VPU adds).
        self.w_q = jnp.stack(wq).astype(jnp.bfloat16)   # (depth, H, dim, dh)
        self.w_k = jnp.stack(wk).astype(jnp.bfloat16)
        self.w_v = jnp.stack(wv).astype(jnp.bfloat16)
        self.w_o = jnp.stack(wo).astype(jnp.bfloat16)   # (depth, H, dh, dim)
        self.b_o = jnp.stack(bo)                        # (depth, 1, dim)  f32
        self.w1 = jnp.stack(w1).astype(jnp.bfloat16)    # (depth, dim, mlp)
        self.b1 = jnp.stack(b1)                         # (depth, 1, mlp)  f32
        self.w2 = jnp.stack(w2).astype(jnp.bfloat16)    # (depth, mlp, dim)
        self.b2 = jnp.stack(b2)                         # (depth, 1, dim)  f32

    def __call__(self, x):
        B, N, D = x.shape
        assert D == self.dim
        H, dh, mlp, depth = self.heads, self.dim_head, self.mlp_dim, self.depth

        kern = functools.partial(_transformer_layer_kernel, heads=H,
                                 scale=dh ** -0.5)

        wmap3 = lambda b, l: (l, 0, 0)        # per-layer weights walk depth axis
        wmap4 = lambda b, l: (l, 0, 0, 0)
        xmap = lambda b, l: (b, 0, 0)         # activation block: constant over l

        in_specs = [
            pl.BlockSpec((None, N, D), xmap),          # x
            pl.BlockSpec((None, 1, D), wmap3),         # ln1_g
            pl.BlockSpec((None, 1, D), wmap3),         # ln1_b
            pl.BlockSpec((None, H, D, dh), wmap4),     # w_q
            pl.BlockSpec((None, H, D, dh), wmap4),     # w_k
            pl.BlockSpec((None, H, D, dh), wmap4),     # w_v
            pl.BlockSpec((None, H, dh, D), wmap4),     # w_o
            pl.BlockSpec((None, 1, D), wmap3),         # b_o
            pl.BlockSpec((None, 1, D), wmap3),         # ln2_g
            pl.BlockSpec((None, 1, D), wmap3),         # ln2_b
            pl.BlockSpec((None, D, mlp), wmap3),       # w1
            pl.BlockSpec((None, 1, mlp), wmap3),       # b1
            pl.BlockSpec((None, mlp, D), wmap3),       # w2
            pl.BlockSpec((None, 1, D), wmap3),         # b2
        ]
        out_spec = pl.BlockSpec((None, N, D), xmap)

        # Scoped-VMEM budget from the actual per-step footprint (2x for the
        # double-buffered weight/activation blocks), with headroom; the defaults
        # (16 MiB v5e / 32 MiB v6e,v7x) would be exceeded at realistic sizes.
        f32b, bf16b = 4, 2
        w_layer = ((3 * H * D * dh + H * dh * D + D * mlp + mlp * D) * bf16b
                   + (6 * D + mlp) * f32b)
        act_inter = (3 * N * D + 2 * H * N * D + 3 * H * N * dh + 2 * H * N * N
                     + H * N * D + 2 * N * mlp) * f32b
        vmem_limit = int(min(64 * 1024 * 1024,
                             max(8 * 1024 * 1024, 2 * (2 * w_layer + act_inter))))

        return pl.pallas_call(
            kern,
            out_shape=jax.ShapeDtypeStruct((B, N, D), x.dtype),
            grid_spec=pltpu.PrefetchScalarGridSpec(
                num_scalar_prefetch=0,
                grid=(B, depth),                       # depth (reduction-like) last
                in_specs=in_specs,
                out_specs=out_spec,
                scratch_shapes=[pltpu.VMEM((N, D), jnp.float32)],   # resident act
            ),
            compiler_params=pltpu.CompilerParams(
                dimension_semantics=("parallel", "arbitrary"),
                vmem_limit_bytes=vmem_limit,
            ),
        )(x, self.ln1_g, self.ln1_b, self.w_q, self.w_k, self.w_v, self.w_o,
          self.b_o, self.ln2_g, self.ln2_b, self.w1, self.b1, self.w2, self.b2)


# ----------------------------------------------------------------------------
# Pure-JAX f32 reference (exact module math, same bf16-stored weights upcast)
# ----------------------------------------------------------------------------
def _transformer_reference(x, m):
    scale = m.dim_head ** -0.5
    wq = m.w_q.astype(jnp.float32)
    wk = m.w_k.astype(jnp.float32)
    wv = m.w_v.astype(jnp.float32)
    wo = m.w_o.astype(jnp.float32)
    w1 = m.w1.astype(jnp.float32)
    w2 = m.w2.astype(jnp.float32)

    def ln(v, g, b):
        mu = jnp.mean(v, -1, keepdims=True)
        var = jnp.mean((v - mu) ** 2, -1, keepdims=True)
        return (v - mu) / jnp.sqrt(var + _LN_EPS) * g + b

    for l in range(m.depth):
        xn = ln(x, m.ln1_g[l, 0], m.ln1_b[l, 0])
        q = jnp.einsum('bnd,hdk->bhnk', xn, wq[l])
        k = jnp.einsum('bnd,hdk->bhnk', xn, wk[l])
        v = jnp.einsum('bnd,hdk->bhnk', xn, wv[l])
        attn = jax.nn.softmax(jnp.einsum('bhqd,bhkd->bhqk', q, k) * scale, axis=-1)
        ctx = jnp.einsum('bhqk,bhkd->bhqd', attn, v)
        x = jnp.einsum('bhnd,hdo->bno', ctx, wo[l]) + m.b_o[l, 0] + x
        xn = ln(x, m.ln2_g[l, 0], m.ln2_b[l, 0])
        h = xn @ w1[l] + m.b1[l, 0]
        h = 0.5 * h * (1.0 + jax.scipy.special.erf(h * _INV_SQRT2))
        x = h @ w2[l] + m.b2[l, 0] + x
    return x


if __name__ == "__main__":
    key = jax.random.PRNGKey(0)
    k_param, k_x = jax.random.split(key)

    # Small shapes consistent with the module.
    B, N = 2, 16
    dim, depth, heads, dim_head, mlp_dim = 32, 2, 4, 16, 64

    model = TransformerPallas(k_param, dim=dim, depth=depth, heads=heads,
                              dim_head=dim_head, mlp_dim=mlp_dim)
    x = jax.random.normal(k_x, (B, N, dim), jnp.float32)

    out = jax.block_until_ready(jax.jit(model.__call__)(x))
    ref = _transformer_reference(x, model)

    assert out.shape == (B, N, dim) and out.dtype == jnp.float32
    assert bool(jnp.all(jnp.isfinite(out)))
    # Kernel feeds bf16 operands to every MXU matmul (f32 accumulation); the
    # reference computes in full f32, so allow mixed-precision-level deviation.
    assert bool(jnp.allclose(out, ref, rtol=5e-2, atol=5e-2))
    print("KERNEL_OK")
</pallas_src>

<mosaic_0001>
module attributes {stable_mosaic.version = 11 : i64} {
  func.func @_transformer_layer_kernel(%arg0: i32, %arg1: i32, %arg2: memref<1x16x32xf32, #tpu.memory_space<vmem>>, %arg3: memref<1x1x32xf32, #tpu.memory_space<vmem>>, %arg4: memref<1x1x32xf32, #tpu.memory_space<vmem>>, %arg5: memref<1x4x32x16xbf16, #tpu.memory_space<vmem>>, %arg6: memref<1x4x32x16xbf16, #tpu.memory_space<vmem>>, %arg7: memref<1x4x32x16xbf16, #tpu.memory_space<vmem>>, %arg8: memref<1x4x16x32xbf16, #tpu.memory_space<vmem>>, %arg9: memref<1x1x32xf32, #tpu.memory_space<vmem>>, %arg10: memref<1x1x32xf32, #tpu.memory_space<vmem>>, %arg11: memref<1x1x32xf32, #tpu.memory_space<vmem>>, %arg12: memref<1x32x64xbf16, #tpu.memory_space<vmem>>, %arg13: memref<1x1x64xf32, #tpu.memory_space<vmem>>, %arg14: memref<1x64x32xbf16, #tpu.memory_space<vmem>>, %arg15: memref<1x1x32xf32, #tpu.memory_space<vmem>>, %arg16: memref<1x16x32xf32, #tpu.memory_space<vmem>>, %arg17: memref<16x32xf32, #tpu.memory_space<vmem>>) attributes {dimension_semantics = [#tpu.dimension_semantics<parallel>, #tpu.dimension_semantics<arbitrary>], iteration_bounds = array<i64: 2, 2>, scalar_prefetch = 0 : i64, scratch_operands = 1 : i64, tpu.core_type = #tpu.core_type<tc>, window_params = [{transform_indices = @transform_0, window_bounds = array<i64: 1, 16, 32>}, {transform_indices = @transform_1, window_bounds = array<i64: 1, 1, 32>}, {transform_indices = @transform_2, window_bounds = array<i64: 1, 1, 32>}, {transform_indices = @transform_3, window_bounds = array<i64: 1, 4, 32, 16>}, {transform_indices = @transform_4, window_bounds = array<i64: 1, 4, 32, 16>}, {transform_indices = @transform_5, window_bounds = array<i64: 1, 4, 32, 16>}, {transform_indices = @transform_6, window_bounds = array<i64: 1, 4, 16, 32>}, {transform_indices = @transform_7, window_bounds = array<i64: 1, 1, 32>}, {transform_indices = @transform_8, window_bounds = array<i64: 1, 1, 32>}, {transform_indices = @transform_9, window_bounds = array<i64: 1, 1, 32>}, {transform_indices = @transform_10, window_bounds = array<i64: 1, 32, 64>}, {transform_indices = @transform_11, window_bounds = array<i64: 1, 1, 64>}, {transform_indices = @transform_12, window_bounds = array<i64: 1, 64, 32>}, {transform_indices = @transform_13, window_bounds = array<i64: 1, 1, 32>}, {transform_indices = @transform_14, window_bounds = array<i64: 1, 16, 32>}]} {
    %c0_i32 = arith.constant 0 : i32
    %0 = arith.cmpi eq, %arg1, %c0_i32 : i32
    %1 = arith.extui %0 : i1 to i32
    %c0_i32_0 = arith.constant 0 : i32
    %2 = arith.cmpi ne, %1, %c0_i32_0 : i32
    scf.if %2 {
      %c0_84 = arith.constant 0 : index
      %c0_85 = arith.constant 0 : index
      %c0_86 = arith.constant 0 : index
      %153 = vector.load %arg2[%c0_84, %c0_85, %c0_86] : memref<1x16x32xf32, #tpu.memory_space<vmem>>, vector<1x16x32xf32>
      %154 = vector.shape_cast %153 : vector<1x16x32xf32> to vector<16x32xf32>
      %c0_87 = arith.constant 0 : index
      %c0_88 = arith.constant 0 : index
      %155 = vector.load %arg17[%c0_87, %c0_88] : memref<16x32xf32, #tpu.memory_space<vmem>>, vector<16x32xf32>
      tpu.vector_store %arg17[%c0_87, %c0_88], %154 {strides = array<i32>} : memref<16x32xf32, #tpu.memory_space<vmem>>, vector<16x32xf32>,
    } else {
    }
    %c0 = arith.constant 0 : index
    %c0_1 = arith.constant 0 : index
    %3 = vector.load %arg17[%c0, %c0_1] : memref<16x32xf32, #tpu.memory_space<vmem>>, vector<16x32xf32>
    %c0_2 = arith.constant 0 : index
    %c0_3 = arith.constant 0 : index
    %c0_4 = arith.constant 0 : index
    %4 = vector.load %arg3[%c0_2, %c0_3, %c0_4] : memref<1x1x32xf32, #tpu.memory_space<vmem>>, vector<1x1x32xf32>
    %5 = vector.shape_cast %4 : vector<1x1x32xf32> to vector<1x32xf32>
    %c0_5 = arith.constant 0 : index
    %c0_6 = arith.constant 0 : index
    %c0_7 = arith.constant 0 : index
    %6 = vector.load %arg4[%c0_5, %c0_6, %c0_7] : memref<1x1x32xf32, #tpu.memory_space<vmem>>, vector<1x1x32xf32>
    %7 = vector.shape_cast %6 : vector<1x1x32xf32> to vector<1x32xf32>
    %cst = arith.constant dense<0.000000e+00> : vector<16xf32>
    %8 = vector.multi_reduction <add>, %3, %cst [1] : vector<16x32xf32> to vector<16xf32>
    %9 = vector.shape_cast %8 : vector<16xf32> to vector<16x1xf32>
    %cst_8 = arith.constant 3.200000e+01 : f32
    %10 = vector.broadcast %cst_8 : f32 to vector<16x1xf32>
    %11 = arith.divf %9, %10 : vector<16x1xf32>
    %12 = vector.broadcast %11 : vector<16x1xf32> to vector<16x32xf32>
    %13 = arith.subf %3, %12 : vector<16x32xf32>
    %14 = arith.mulf %13, %13 : vector<16x32xf32>
    %cst_9 = arith.constant dense<0.000000e+00> : vector<16xf32>
    %15 = vector.multi_reduction <add>, %14, %cst_9 [1] : vector<16x32xf32> to vector<16xf32>
    %16 = vector.shape_cast %15 : vector<16xf32> to vector<16x1xf32>
    %cst_10 = arith.constant 3.200000e+01 : f32
    %17 = vector.broadcast %cst_10 : f32 to vector<16x1xf32>
    %18 = arith.divf %16, %17 : vector<16x1xf32>
    %cst_11 = arith.constant 9.99999974E-6 : f32
    %19 = vector.broadcast %cst_11 : f32 to vector<16x1xf32>
    %20 = arith.addf %18, %19 : vector<16x1xf32>
    %21 = math.rsqrt %20 : vector<16x1xf32>
    %22 = vector.broadcast %21 : vector<16x1xf32> to vector<16x32xf32>
    %23 = arith.mulf %13, %22 : vector<16x32xf32>
    %24 = vector.broadcast %5 : vector<1x32xf32> to vector<16x32xf32>
    %25 = arith.mulf %23, %24 : vector<16x32xf32>
    %26 = vector.broadcast %7 : vector<1x32xf32> to vector<16x32xf32>
    %27 = arith.addf %25, %26 : vector<16x32xf32>
    %28 = arith.truncf %27 : vector<16x32xf32> to vector<16x32xbf16>
    %29 = vector.shape_cast %28 : vector<16x32xbf16> to vector<1x16x32xbf16>
    %30 = vector.broadcast %29 : vector<1x16x32xbf16> to vector<4x16x32xbf16>
    %c0_12 = arith.constant 0 : index
    %c0_13 = arith.constant 0 : index
    %c0_14 = arith.constant 0 : index
    %c0_15 = arith.constant 0 : index
    %31 = vector.load %arg5[%c0_12, %c0_13, %c0_14, %c0_15] : memref<1x4x32x16xbf16, #tpu.memory_space<vmem>>, vector<1x4x32x16xbf16>
    %32 = vector.shape_cast %31 : vector<1x4x32x16xbf16> to vector<4x32x16xbf16>
    "tpu.trace_start"() <{level = 10 : i32, message = "hnd,hdk->hnk"}> : () -> ()
    %cst_16 = arith.constant dense<0.000000e+00> : vector<4x16x16xf32>
    %33 = tpu.matmul %30, %32, %cst_16 {dimension_numbers = #tpu.dot_dimension_numbers<[2], [1], [1], [2], [0, 0, 0, 1, 1, 2], [0], [0]>} : vector<4x16x32xbf16>, vector<4x32x16xbf16>, vector<4x16x16xf32> -> vector<4x16x16xf32>
    "tpu.trace_stop"() : () -> ()
    %c0_17 = arith.constant 0 : index
    %c0_18 = arith.constant 0 : index
    %c0_19 = arith.constant 0 : index
    %c0_20 = arith.constant 0 : index
    %34 = vector.load %arg6[%c0_17, %c0_18, %c0_19, %c0_20] : memref<1x4x32x16xbf16, #tpu.memory_space<vmem>>, vector<1x4x32x16xbf16>
    %35 = vector.shape_cast %34 : vector<1x4x32x16xbf16> to vector<4x32x16xbf16>
    "tpu.trace_start"() <{level = 10 : i32, message = "hnd,hdk->hnk"}> : () -> ()
    %cst_21 = arith.constant dense<0.000000e+00> : vector<4x16x16xf32>
    %36 = tpu.matmul %30, %35, %cst_21 {dimension_numbers = #tpu.dot_dimension_numbers<[2], [1], [1], [2], [0, 0, 0, 1, 1, 2], [0], [0]>} : vector<4x16x32xbf16>, vector<4x32x16xbf16>, vector<4x16x16xf32> -> vector<4x16x16xf32>
    "tpu.trace_stop"() : () -> ()
    %c0_22 = arith.constant 0 : index
    %c0_23 = arith.constant 0 : index
    %c0_24 = arith.constant 0 : index
    %c0_25 = arith.constant 0 : index
    %37 = vector.load %arg7[%c0_22, %c0_23, %c0_24, %c0_25] : memref<1x4x32x16xbf16, #tpu.memory_space<vmem>>, vector<1x4x32x16xbf16>
    %38 = vector.shape_cast %37 : vector<1x4x32x16xbf16> to vector<4x32x16xbf16>
    "tpu.trace_start"() <{level = 10 : i32, message = "hnd,hdk->hnk"}> : () -> ()
    %cst_26 = arith.constant dense<0.000000e+00> : vector<4x16x16xf32>
    %39 = tpu.matmul %30, %38, %cst_26 {dimension_numbers = #tpu.dot_dimension_numbers<[2], [1], [1], [2], [0, 0, 0, 1, 1, 2], [0], [0]>} : vector<4x16x32xbf16>, vector<4x32x16xbf16>, vector<4x16x16xf32> -> vector<4x16x16xf32>
    "tpu.trace_stop"() : () -> ()
    %40 = arith.truncf %33 : vector<4x16x16xf32> to vector<4x16x16xbf16>
    %41 = arith.truncf %36 : vector<4x16x16xf32> to vector<4x16x16xbf16>
    "tpu.trace_start"() <{level = 10 : i32, message = "hqd,hkd->hqk"}> : () -> ()
    %cst_27 = arith.constant dense<0.000000e+00> : vector<4x16x16xf32>
    %42 = tpu.matmul %40, %41, %cst_27 {dimension_numbers = #tpu.dot_dimension_numbers<[2], [2], [1], [1], [0, 0, 0, 1, 1, 1], [0], [0]>} : vector<4x16x16xbf16>, vector<4x16x16xbf16>, vector<4x16x16xf32> -> vector<4x16x16xf32>
    "tpu.trace_stop"() : () -> ()
    %cst_28 = arith.constant 2.500000e-01 : f32
    %43 = vector.broadcast %cst_28 : f32 to vector<4x16x16xf32>
    %44 = arith.mulf %42, %43 : vector<4x16x16xf32>
    %cst_29 = arith.constant dense<0xFF800000> : vector<4x16xf32>
    %45 = vector.multi_reduction <maximumf>, %44, %cst_29 [2] : vector<4x16x16xf32> to vector<4x16xf32>
    %46 = vector.shape_cast %45 : vector<4x16xf32> to vector<4x16x1xf32>
    %47 = vector.broadcast %46 : vector<4x16x1xf32> to vector<4x16x16xf32>
    %48 = arith.subf %44, %47 : vector<4x16x16xf32>
    %49 = math.exp %48 : vector<4x16x16xf32>
    %cst_30 = arith.constant dense<0.000000e+00> : vector<4x16xf32>
    %50 = vector.multi_reduction <add>, %49, %cst_30 [2] : vector<4x16x16xf32> to vector<4x16xf32>
    %51 = vector.shape_cast %50 : vector<4x16xf32> to vector<4x16x1xf32>
    %52 = tpu.reciprocal %51 {approx = true} : vector<4x16x1xf32> -> vector<4x16x1xf32>
    %53 = vector.broadcast %52 : vector<4x16x1xf32> to vector<4x16x16xf32>
    %54 = arith.mulf %49, %53 : vector<4x16x16xf32>
    %55 = arith.truncf %54 : vector<4x16x16xf32> to vector<4x16x16xbf16>
    %56 = arith.truncf %39 : vector<4x16x16xf32> to vector<4x16x16xbf16>
    "tpu.trace_start"() <{level = 10 : i32, message = "hqk,hkd->hqd"}> : () -> ()
    %cst_31 = arith.constant dense<0.000000e+00> : vector<4x16x16xf32>
    %57 = tpu.matmul %55, %56, %cst_31 {dimension_numbers = #tpu.dot_dimension_numbers<[2], [1], [1], [2], [0, 0, 0, 1, 1, 2], [0], [0]>} : vector<4x16x16xbf16>, vector<4x16x16xbf16>, vector<4x16x16xf32> -> vector<4x16x16xf32>
    "tpu.trace_stop"() : () -> ()
    %58 = arith.truncf %57 : vector<4x16x16xf32> to vector<4x16x16xbf16>
    %c0_32 = arith.constant 0 : index
    %c0_33 = arith.constant 0 : index
    %c0_34 = arith.constant 0 : index
    %c0_35 = arith.constant 0 : index
    %59 = vector.load %arg8[%c0_32, %c0_33, %c0_34, %c0_35] : memref<1x4x16x32xbf16, #tpu.memory_space<vmem>>, vector<1x4x16x32xbf16>
    %60 = vector.shape_cast %59 : vector<1x4x16x32xbf16> to vector<4x16x32xbf16>
    "tpu.trace_start"() <{level = 10 : i32, message = "hnd,hdo->hno"}> : () -> ()
    %cst_36 = arith.constant dense<0.000000e+00> : vector<4x16x32xf32>
    %61 = tpu.matmul %58, %60, %cst_36 {dimension_numbers = #tpu.dot_dimension_numbers<[2], [1], [1], [2], [0, 0, 0, 1, 1, 2], [0], [0]>} : vector<4x16x16xbf16>, vector<4x16x32xbf16>, vector<4x16x32xf32> -> vector<4x16x32xf32>
    "tpu.trace_stop"() : () -> ()
    %cst_37 = arith.constant dense<0.000000e+00> : vector<16x32xf32>
    %62 = vector.multi_reduction <add>, %61, %cst_37 [0] : vector<4x16x32xf32> to vector<16x32xf32>
    %63 = arith.addf %3, %62 : vector<16x32xf32>
    %c0_38 = arith.constant 0 : index
    %c0_39 = arith.constant 0 : index
    %c0_40 = arith.constant 0 : index
    %64 = vector.load %arg9[%c0_38, %c0_39, %c0_40] : memref<1x1x32xf32, #tpu.memory_space<vmem>>, vector<1x1x32xf32>
    %65 = vector.shape_cast %64 : vector<1x1x32xf32> to vector<1x32xf32>
    %66 = vector.broadcast %65 : vector<1x32xf32> to vector<16x32xf32>
    %67 = arith.addf %63, %66 : vector<16x32xf32>
    %c0_41 = arith.constant 0 : index
    %c0_42 = arith.constant 0 : index
    %c0_43 = arith.constant 0 : index
    %68 = vector.load %arg10[%c0_41, %c0_42, %c0_43] : memref<1x1x32xf32, #tpu.memory_space<vmem>>, vector<1x1x32xf32>
    %69 = vector.shape_cast %68 : vector<1x1x32xf32> to vector<1x32xf32>
    %c0_44 = arith.constant 0 : index
    %c0_45 = arith.constant 0 : index
    %c0_46 = arith.constant 0 : index
    %70 = vector.load %arg11[%c0_44, %c0_45, %c0_46] : memref<1x1x32xf32, #tpu.memory_space<vmem>>, vector<1x1x32xf32>
    %71 = vector.shape_cast %70 : vector<1x1x32xf32> to vector<1x32xf32>
    %cst_47 = arith.constant dense<0.000000e+00> : vector<16xf32>
    %72 = vector.multi_reduction <add>, %67, %cst_47 [1] : vector<16x32xf32> to vector<16xf32>
    %73 = vector.shape_cast %72 : vector<16xf32> to vector<16x1xf32>
    %cst_48 = arith.constant 3.200000e+01 : f32
    %74 = vector.broadcast %cst_48 : f32 to vector<16x1xf32>
    %75 = arith.divf %73, %74 : vector<16x1xf32>
    %76 = vector.broadcast %75 : vector<16x1xf32> to vector<16x32xf32>
    %77 = arith.subf %67, %76 : vector<16x32xf32>
    %78 = arith.mulf %77, %77 : vector<16x32xf32>
    %cst_49 = arith.constant dense<0.000000e+00> : vector<16xf32>
    %79 = vector.multi_reduction <add>, %78, %cst_49 [1] : vector<16x32xf32> to vector<16xf32>
    %80 = vector.shape_cast %79 : vector<16xf32> to vector<16x1xf32>
    %cst_50 = arith.constant 3.200000e+01 : f32
    %81 = vector.broadcast %cst_50 : f32 to vector<16x1xf32>
    %82 = arith.divf %80, %81 : vector<16x1xf32>
    %cst_51 = arith.constant 9.99999974E-6 : f32
    %83 = vector.broadcast %cst_51 : f32 to vector<16x1xf32>
    %84 = arith.addf %82, %83 : vector<16x1xf32>
    %85 = math.rsqrt %84 : vector<16x1xf32>
    %86 = vector.broadcast %85 : vector<16x1xf32> to vector<16x32xf32>
    %87 = arith.mulf %77, %86 : vector<16x32xf32>
    %88 = vector.broadcast %69 : vector<1x32xf32> to vector<16x32xf32>
    %89 = arith.mulf %87, %88 : vector<16x32xf32>
    %90 = vector.broadcast %71 : vector<1x32xf32> to vector<16x32xf32>
    %91 = arith.addf %89, %90 : vector<16x32xf32>
    %92 = arith.truncf %91 : vector<16x32xf32> to vector<16x32xbf16>
    %c0_52 = arith.constant 0 : index
    %c0_53 = arith.constant 0 : index
    %c0_54 = arith.constant 0 : index
    %93 = vector.load %arg12[%c0_52, %c0_53, %c0_54] : memref<1x32x64xbf16, #tpu.memory_space<vmem>>, vector<1x32x64xbf16>
    %94 = vector.shape_cast %93 : vector<1x32x64xbf16> to vector<32x64xbf16>
    %cst_55 = arith.constant dense<0.000000e+00> : vector<16x64xf32>
    %95 = tpu.matmul %92, %94, %cst_55 {dimension_numbers = #tpu.dot_dimension_numbers<[1], [0], [0], [1], [0, 0, 1, 1], [], []>} : vector<16x32xbf16>, vector<32x64xbf16>, vector<16x64xf32> -> vector<16x64xf32>
    %c0_56 = arith.constant 0 : index
    %c0_57 = arith.constant 0 : index
    %c0_58 = arith.constant 0 : index
    %96 = vector.load %arg13[%c0_56, %c0_57, %c0_58] : memref<1x1x64xf32, #tpu.memory_space<vmem>>, vector<1x1x64xf32>
    %97 = vector.shape_cast %96 : vector<1x1x64xf32> to vector<1x64xf32>
    %98 = vector.broadcast %97 : vector<1x64xf32> to vector<16x64xf32>
    %99 = arith.addf %95, %98 : vector<16x64xf32>
    %cst_59 = arith.constant 5.000000e-01 : f32
    %100 = vector.broadcast %cst_59 : f32 to vector<16x64xf32>
    %101 = arith.mulf %100, %99 : vector<16x64xf32>
    %cst_60 = arith.constant 0.707106769 : f32
    %102 = vector.broadcast %cst_60 : f32 to vector<16x64xf32>
    %103 = arith.mulf %99, %102 : vector<16x64xf32>
    %104 = math.absf %103 : vector<16x64xf32>
    %cst_61 = arith.constant 0.327591091 : f32
    %105 = vector.broadcast %cst_61 : f32 to vector<16x64xf32>
    %106 = arith.mulf %105, %104 : vector<16x64xf32>
    %cst_62 = arith.constant 1.000000e+00 : f32
    %107 = vector.broadcast %cst_62 : f32 to vector<16x64xf32>
    %108 = arith.addf %107, %106 : vector<16x64xf32>
    %cst_63 = arith.constant 1.000000e+00 : f32
    %109 = vector.broadcast %cst_63 : f32 to vector<16x64xf32>
    %110 = arith.divf %109, %108 : vector<16x64xf32>
    %cst_64 = arith.constant 1.06140542 : f32
    %111 = vector.broadcast %cst_64 : f32 to vector<16x64xf32>
    %112 = arith.mulf %111, %110 : vector<16x64xf32>
    %cst_65 = arith.constant -1.45315206 : f32
    %113 = vector.broadcast %cst_65 : f32 to vector<16x64xf32>
    %114 = arith.addf %112, %113 : vector<16x64xf32>
    %115 = arith.mulf %114, %110 : vector<16x64xf32>
    %cst_66 = arith.constant 1.42141378 : f32
    %116 = vector.broadcast %cst_66 : f32 to vector<16x64xf32>
    %117 = arith.addf %115, %116 : vector<16x64xf32>
    %118 = arith.mulf %117, %110 : vector<16x64xf32>
    %cst_67 = arith.constant -0.284496725 : f32
    %119 = vector.broadcast %cst_67 : f32 to vector<16x64xf32>
    %120 = arith.addf %118, %119 : vector<16x64xf32>
    %121 = arith.mulf %120, %110 : vector<16x64xf32>
    %cst_68 = arith.constant 0.254829586 : f32
    %122 = vector.broadcast %cst_68 : f32 to vector<16x64xf32>
    %123 = arith.addf %121, %122 : vector<16x64xf32>
    %124 = arith.mulf %123, %110 : vector<16x64xf32>
    %cst_69 = arith.constant 0.000000e+00 : f32
    %125 = vector.broadcast %cst_69 : f32 to vector<16x64xf32>
    %126 = arith.subf %125, %104 : vector<16x64xf32>
    %127 = arith.mulf %126, %104 : vector<16x64xf32>
    %128 = math.exp %127 : vector<16x64xf32>
    %129 = arith.mulf %124, %128 : vector<16x64xf32>
    %cst_70 = arith.constant 1.000000e+00 : f32
    %130 = vector.broadcast %cst_70 : f32 to vector<16x64xf32>
    %131 = arith.subf %130, %129 : vector<16x64xf32>
    %cst_71 = arith.constant 0.000000e+00 : f32
    %132 = vector.broadcast %cst_71 : f32 to vector<16x64xf32>
    %133 = arith.cmpf oge, %103, %132 : vector<16x64xf32>
    %cst_72 = arith.constant 0.000000e+00 : f32
    %134 = vector.broadcast %cst_72 : f32 to vector<16x64xf32>
    %135 = arith.subf %134, %131 : vector<16x64xf32>
    %136 = arith.select %133, %131, %135 : vector<16x64xi1>, vector<16x64xf32>
    %cst_73 = arith.constant 1.000000e+00 : f32
    %137 = vector.broadcast %cst_73 : f32 to vector<16x64xf32>
    %138 = arith.addf %137, %136 : vector<16x64xf32>
    %139 = arith.mulf %101, %138 : vector<16x64xf32>
    %140 = arith.truncf %139 : vector<16x64xf32> to vector<16x64xbf16>
    %c0_74 = arith.constant 0 : index
    %c0_75 = arith.constant 0 : index
    %c0_76 = arith.constant 0 : index
    %141 = vector.load %arg14[%c0_74, %c0_75, %c0_76] : memref<1x64x32xbf16, #tpu.memory_space<vmem>>, vector<1x64x32xbf16>
    %142 = vector.shape_cast %141 : vector<1x64x32xbf16> to vector<64x32xbf16>
    %cst_77 = arith.constant dense<0.000000e+00> : vector<16x32xf32>
    %143 = tpu.matmul %140, %142, %cst_77 {dimension_numbers = #tpu.dot_dimension_numbers<[1], [0], [0], [1], [0, 0, 1, 1], [], []>} : vector<16x64xbf16>, vector<64x32xbf16>, vector<16x32xf32> -> vector<16x32xf32>
    %c0_78 = arith.constant 0 : index
    %c0_79 = arith.constant 0 : index
    %c0_80 = arith.constant 0 : index
    %144 = vector.load %arg15[%c0_78, %c0_79, %c0_80] : memref<1x1x32xf32, #tpu.memory_space<vmem>>, vector<1x1x32xf32>
    %145 = vector.shape_cast %144 : vector<1x1x32xf32> to vector<1x32xf32>
    %146 = vector.broadcast %145 : vector<1x32xf32> to vector<16x32xf32>
    %147 = arith.addf %143, %146 : vector<16x32xf32>
    %148 = arith.addf %67, %147 : vector<16x32xf32>
    %c0_81 = arith.constant 0 : index
    %c0_82 = arith.constant 0 : index
    %149 = vector.load %arg17[%c0_81, %c0_82] : memref<16x32xf32, #tpu.memory_space<vmem>>, vector<16x32xf32>
    tpu.vector_store %arg17[%c0_81, %c0_82], %148 {strides = array<i32>} : memref<16x32xf32, #tpu.memory_space<vmem>>, vector<16x32xf32>,
    %c1_i32 = arith.constant 1 : i32
    %150 = arith.cmpi eq, %arg1, %c1_i32 : i32
    %151 = arith.extui %150 : i1 to i32
    %c0_i32_83 = arith.constant 0 : i32
    %152 = arith.cmpi ne, %151, %c0_i32_83 : i32
    scf.if %152 {
      %c0_84 = arith.constant 0 : index
      %c0_85 = arith.constant 0 : index
      %c0_86 = arith.constant 0 : index
      %153 = vector.load %arg16[%c0_84, %c0_85, %c0_86] : memref<1x16x32xf32, #tpu.memory_space<vmem>>, vector<1x16x32xf32>
      %154 = vector.shape_cast %153 : vector<1x16x32xf32> to vector<16x32xf32>
      %155 = vector.shape_cast %148 : vector<16x32xf32> to vector<1x16x32xf32>
      tpu.vector_store %arg16[%c0_84, %c0_85, %c0_86], %155 {strides = array<i32>} : memref<1x16x32xf32, #tpu.memory_space<vmem>>, vector<1x16x32xf32>,
    } else {
    }
    return
  }
  func.func @transform_0(%arg0: i32, %arg1: i32) -> (i32, i32, i32) {
    %c0_i32 = arith.constant 0 : i32
    %c0_i32_0 = arith.constant 0 : i32
    %c0_i32_1 = arith.constant 0 : i32
    return %arg0, %c0_i32, %c0_i32_0 : i32, i32, i32
  }
  func.func @transform_1(%arg0: i32, %arg1: i32) -> (i32, i32, i32) {
    %c0_i32 = arith.constant 0 : i32
    %c0_i32_0 = arith.constant 0 : i32
    %c0_i32_1 = arith.constant 0 : i32
    return %arg1, %c0_i32, %c0_i32_0 : i32, i32, i32
  }
  func.func @transform_2(%arg0: i32, %arg1: i32) -> (i32, i32, i32) {
    %c0_i32 = arith.constant 0 : i32
    %c0_i32_0 = arith.constant 0 : i32
    %c0_i32_1 = arith.constant 0 : i32
    return %arg1, %c0_i32, %c0_i32_0 : i32, i32, i32
  }
  func.func @transform_3(%arg0: i32, %arg1: i32) -> (i32, i32, i32, i32) {
    %c0_i32 = arith.constant 0 : i32
    %c0_i32_0 = arith.constant 0 : i32
    %c0_i32_1 = arith.constant 0 : i32
    %c0_i32_2 = arith.constant 0 : i32
    return %arg1, %c0_i32, %c0_i32_0, %c0_i32_1 : i32, i32, i32, i32
  }
  func.func @transform_4(%arg0: i32, %arg1: i32) -> (i32, i32, i32, i32) {
    %c0_i32 = arith.constant 0 : i32
    %c0_i32_0 = arith.constant 0 : i32
    %c0_i32_1 = arith.constant 0 : i32
    %c0_i32_2 = arith.constant 0 : i32
    return %arg1, %c0_i32, %c0_i32_0, %c0_i32_1 : i32, i32, i32, i32
  }
  func.func @transform_5(%arg0: i32, %arg1: i32) -> (i32, i32, i32, i32) {
    %c0_i32 = arith.constant 0 : i32
    %c0_i32_0 = arith.constant 0 : i32
    %c0_i32_1 = arith.constant 0 : i32
    %c0_i32_2 = arith.constant 0 : i32
    return %arg1, %c0_i32, %c0_i32_0, %c0_i32_1 : i32, i32, i32, i32
  }
  func.func @transform_6(%arg0: i32, %arg1: i32) -> (i32, i32, i32, i32) {
    %c0_i32 = arith.constant 0 : i32
    %c0_i32_0 = arith.constant 0 : i32
    %c0_i32_1 = arith.constant 0 : i32
    %c0_i32_2 = arith.constant 0 : i32
    return %arg1, %c0_i32, %c0_i32_0, %c0_i32_1 : i32, i32, i32, i32
  }
  func.func @transform_7(%arg0: i32, %arg1: i32) -> (i32, i32, i32) {
    %c0_i32 = arith.constant 0 : i32
    %c0_i32_0 = arith.constant 0 : i32
    %c0_i32_1 = arith.constant 0 : i32
    return %arg1, %c0_i32, %c0_i32_0 : i32, i32, i32
  }
  func.func @transform_8(%arg0: i32, %arg1: i32) -> (i32, i32, i32) {
    %c0_i32 = arith.constant 0 : i32
    %c0_i32_0 = arith.constant 0 : i32
    %c0_i32_1 = arith.constant 0 : i32
    return %arg1, %c0_i32, %c0_i32_0 : i32, i32, i32
  }
  func.func @transform_9(%arg0: i32, %arg1: i32) -> (i32, i32, i32) {
    %c0_i32 = arith.constant 0 : i32
    %c0_i32_0 = arith.constant 0 : i32
    %c0_i32_1 = arith.constant 0 : i32
    return %arg1, %c0_i32, %c0_i32_0 : i32, i32, i32
  }
  func.func @transform_10(%arg0: i32, %arg1: i32) -> (i32, i32, i32) {
    %c0_i32 = arith.constant 0 : i32
    %c0_i32_0 = arith.constant 0 : i32
    %c0_i32_1 = arith.constant 0 : i32
    return %arg1, %c0_i32, %c0_i32_0 : i32, i32, i32
  }
  func.func @transform_11(%arg0: i32, %arg1: i32) -> (i32, i32, i32) {
    %c0_i32 = arith.constant 0 : i32
    %c0_i32_0 = arith.constant 0 : i32
    %c0_i32_1 = arith.constant 0 : i32
    return %arg1, %c0_i32, %c0_i32_0 : i32, i32, i32
  }
  func.func @transform_12(%arg0: i32, %arg1: i32) -> (i32, i32, i32) {
    %c0_i32 = arith.constant 0 : i32
    %c0_i32_0 = arith.constant 0 : i32
    %c0_i32_1 = arith.constant 0 : i32
    return %arg1, %c0_i32, %c0_i32_0 : i32, i32, i32
  }
  func.func @transform_13(%arg0: i32, %arg1: i32) -> (i32, i32, i32) {
    %c0_i32 = arith.constant 0 : i32
    %c0_i32_0 = arith.constant 0 : i32
    %c0_i32_1 = arith.constant 0 : i32
    return %arg1, %c0_i32, %c0_i32_0 : i32, i32, i32
  }
  func.func @transform_14(%arg0: i32, %arg1: i32) -> (i32, i32, i32) {
    %c0_i32 = arith.constant 0 : i32
    %c0_i32_0 = arith.constant 0 : i32
    %c0_i32_1 = arith.constant 0 : i32
    return %arg0, %c0_i32, %c0_i32_0 : i32, i32, i32
  }
}

</mosaic_0001>

<bundles_post_ra>
// kernel: a_call__.1
= control target key start
LH: loop header
LB: loop body
LE: loop exit
PB: predicated region body
PF: predicated region fallthrough
CT: control target
= control target key end

     0   :  { %s3775_s0 = inlined_call_operand.hbm [shape: f32[2,16,32], index: 0, kind: input, shape index: {}]   ;;  %s3776_s1 = inlined_call_operand.vmem [shape: f32[2,1,32], index: 1, kind: input, shape index: {}, may-alias: {1,8}]   ;;  %s3777_s2 = inlined_call_operand.vmem [shape: f32[2,1,32], index: 2, kind: input, shape index: {}, may-alias: {2,9}]   ;;  %s3778_s3 = inlined_call_operand.hbm [shape: bf16[2,4,32,16], index: 3, kind: input, shape index: {}]   ;;  %s3779_s4 = inlined_call_operand.hbm [shape: bf16[2,4,32,16], index: 4, kind: input, shape index: {}]   ;;  %s3780_s5 = inlined_call_operand.hbm [shape: bf16[2,4,32,16], index: 5, kind: input, shape index: {}]   ;;  %s3781_s6 = inlined_call_operand.hbm [shape: bf16[2,4,16,32], index: 6, kind: input, shape index: {}]   ;;  %s3782_s7 = inlined_call_operand.vmem [shape: f32[2,1,32], index: 7, kind: input, shape index: {}]   ;;  %s3783_s8 = inlined_call_operand.vmem [shape: f32[2,1,32], index: 8, kind: input, shape index: {}, may-alias: {1,8}]   ;;  %s3784_s9 = inlined_call_operand.vmem [shape: f32[2,1,32], index: 9, kind: input, shape index: {}, may-alias: {2,9}]   ;;  %s3785_s10 = inlined_call_operand.hbm [shape: bf16[2,32,64], index: 10, kind: input, shape index: {}]   ;;  %s3786_s11 = inlined_call_operand.vmem [shape: f32[2,1,64], index: 11, kind: input, shape index: {}]   ;;  %s3787_s12 = inlined_call_operand.hbm [shape: bf16[2,64,32], index: 12, kind: input, shape index: {}]   ;;  %s3788_s13 = inlined_call_operand.vmem [shape: f32[2,1,32], index: 13, kind: input, shape index: {}]   ;;  %s3789_s14 = inlined_call_operand.hbm [shape: f32[2,16,32], index: 14, kind: output, shape index: {}]  }
   0x1   :  { %3817 = sst [smem:[#allocation39_spill]] %s3775_s0 }
   0x2   :  { %3818 = sst [smem:[#allocation40_spill]] %s3776_s1 }
   0x3   :  { %3819 = sst [smem:[#allocation41_spill]] %s3777_s2 }
   0x4   :  { %3820 = sst [smem:[#allocation42_spill]] %s3778_s3 }
   0x5   :  { %3821 = sst [smem:[#allocation43_spill]] %s3779_s4 }
   0x6   :  { %3822 = sst [smem:[#allocation44_spill]] %s3780_s5 }
   0x7   :  { %3823 = sst [smem:[#allocation45_spill]] %s3781_s6 }
   0x8   :  { %3824 = sst [smem:[#allocation46_spill]] %s3782_s7 }
   0x9   :  { %3825 = sst [smem:[#allocation47_spill]] %s3783_s8 }
   0xa   :  { %3826 = sst [smem:[#allocation48_spill]] %s3784_s9 }
   0xb   :  { %3827 = sst [smem:[#allocation49_spill]] %s3785_s10 }
   0xc   :  { %3828 = sst [smem:[#allocation50_spill]] %s3786_s11 }
   0xd   :  { %3829 = sst [smem:[#allocation51_spill]] %s3787_s12 }
   0xe   :  { %3830 = sst [smem:[#allocation52_spill]] %s3788_s13 }
   0xf   :  { %3831 = sst [smem:[#allocation53_spill]] %s3789_s14 }
  0x10   :  { %19 = vsyncpa [#allocation4], 0 }
  0x11   :  { %21 = vsyncpa [#allocation4 + $0x1], 0 }
  0x12   :  { %22 = vsyncpa [#allocation7], 0 }
  0x13   :  { %24 = vsyncpa [#allocation7 + $0x1], 0 }
  0x14   :  { %25 = vsyncpa [#allocation10], 0 }
  0x15   :  { %27 = vsyncpa [#allocation10 + $0x1], 0 }
  0x16   :  { %28 = vsyncpa [#allocation13], 0 }
  0x17   :  { %30 = vsyncpa [#allocation13 + $0x1], 0 }
  0x18   :  { %31 = vsyncpa [#allocation5], 0 }
  0x19   :  { %33 = vsyncpa [#allocation5 + $0x1], 0  ;;  %s3198_s29 = smov 0   ;;  %s3200_s30 = smov 0  }
  0x1a   :  { %s3202_s15 = smov 0   ;;  %s3204_s16 = smov 0  }
  0x1b   :  { %s3206_s17 = smov 0   ;;  %s3208_s18 = smov 0  }
  0x1c   :  { %s3210_s19 = smov 0   ;;  %s3212_s20 = smov 0  }
  0x1d   :  { %s3214_s21 = smov 0   ;;  %s3216_s22 = smov 0  }
  0x1e   :  { %s3218_s23 = smov 0  }
  0x1f LB: > { %3832 = sst [smem:[#allocation21_spill]] %s3078_s30  ;;  %s48_s24 = sadd.s32 1, %s3106_s21  ;;  %s3114_s23 = sphi %s3218_s23, %s39_s23   ;;  %s3110_s22 = sphi %s3216_s22, %s3907_s22   ;;  %s3106_s21 = sphi %s3214_s21, %s3906_s21   ;;  %s3102_s20 = sphi %s3212_s20, %s3905_s20   ;;  %s3098_s19 = sphi %s3210_s19, %s3904_s19   ;;  %s3094_s18 = sphi %s3208_s18, %s3903_s18   ;;  %s3090_s17 = sphi %s3206_s17, %s3902_s17   ;;  %s3086_s16 = sphi %s3204_s16, %s3901_s16   ;;  %s3082_s15 = sphi %s3202_s15, %s3900_s15   ;;  %s3078_s30 = sphi %s3200_s30, %s3899_s30   ;;  %s3074_s29 = sphi %s3198_s29, %s3898_s29  }
  0x20   : > { %3833 = sst [smem:[#allocation22_spill]] %s3082_s15  ;;  %p66_p0 = scmp.eq.s32.totalorder %s3114_s23, 0 }
  0x21   : > { %3834 = sst [smem:[#allocation23_spill]] %s3086_s16  ;;  %p3255_p1 = scmp.ge.s32.totalorder %s48_s24, 2 }
  0x22   : > { %3835 = sst [smem:[#allocation24_spill]] %s3090_s17  ;;  %s136_s26 = sadd.s32 1, %s3082_s15 }
  0x23   : > { %3836 = sst [smem:[#allocation25_spill]] %s3094_s18  ;;  %p143_p2 = scmp.ne.s32.totalorder %s3082_s15, %s3078_s30 }
  0x24   : > { %3837 = sst [smem:[#allocation26_spill]] %s3098_s19  ;;  %p149_p3 = scmp.ne.s32.totalorder %s3078_s30, %s3074_s29 }
  0x25   : > { %3838 = sst [smem:[#allocation27_spill]] %s3102_s20  ;;  %s3909_s24 = smov (%p3255_p1, %s48_s24), 0 }
  0x26   : > { %3839 = sst [smem:[#allocation28_spill]] %s3106_s21  ;;  %p3270_p4 = por %p143_p2, %p66_p0 }
  0x27   : > { %3840 = sst [smem:[#allocation29_spill]] %s3110_s22  ;;  %s133_s28 = ssub.s32 %s3106_s21, %s3909_s24 }
  0x28   : > { %3841 = sst [smem:[#allocation30_spill]] %s3114_s23  ;;  %p3797_p5 = scmp.lt.s32.totalorder %s3114_s23, 4 }
  0x29   : > { %3843 = sst [smem:[#allocation31_spill]] %s3909_s24  ;;  %p134_p6 = scmp.eq.s32.totalorder %s133_s28, 0 }
  0x2a   : > { %s3278_s14 = sand.u32 1, %s3114_s23   ;;  %s3281_s20 = sand.u32 1, %s3082_s15  }
  0x2b   : > { %s3284_s13 = scalar_select %p134_p6, %s3082_s15, %s136_s26  }
  0x2c   : > { %s3287_s11 = sshll.u32 %s3281_s20, 6  ;;  %s3290_s9 = sshll.u32 %s3106_s21, 6 }
  0x2d   : > { %3845 = sst [smem:[#allocation32_spill]] %s3284_s13  ;;  %s497_s2 = scalar_lea.vmem [#allocation6], %s3287_s11 }
  0x2e   : > { %s3846_s3 = sld [smem:[#allocation42_spill]]  ;;  %s505_s1 = sshll.u32 %s497_s2, 4  ;;  %s506_s1 = int_to_ptr.vmem [resolvable:$true] %s505_s1 }
  0x2f   : > { %p3301_p7 = pnand %p3797_p5, %p3270_p4  ;;  %p2354_p8 = scmp.ge.s32.totalorder %s3114_s23, 1 }
  0x30   : > { %p653_p9 = scmp.lt.s32.totalorder %s3114_s23, 5  ;;  %s3794_s8 = scalar_lea.sflag [#allocation7], %s3278_s14 }
  0x31   : > { %s3799_s24 = smov 64   ;;  %s3850_s5 = sld [smem:[#allocation44_spill]] }
  0x32   : > { %p3315_p10 = pnand %p2354_p8, %p653_p9  ;;  %s541_s19 = scalar_lea.vmem [#allocation9], %s3287_s11 }
  0x33   : > { %s549_s12 = sshll.u32 %s541_s19, 4  ;;  %s3851_s10 = sld [smem:[#allocation49_spill]]  ;;  %s550_s12 = int_to_ptr.vmem [resolvable:$true] %s549_s12 }
  0x34   : > { %s502_s28 = scalar_lea.hbm %s3846_s3, %s3290_s9  ;;  %s2348_s3 = sshll.u32 %s3281_s20, 4 }
  0x35   : > { %s503_s7 = sshll.u32 %s502_s28, 4  ;;  %s3801_s28 = smov 4   ;;  %s504_s7 = int_to_ptr.hbm [resolvable:$true] %s503_s7 }
  0x36   : > { %2596 = dma.hbm_to_vmem [thread:$0]  (!%p3301_p7), %s504_s7, 1024, %s506_s1, %s3794_s8, %s3799_s24, %s3799_s24, %s3801_s28  }
  0x37   : > { %s3848_s2 = scalar_select %p3315_p10, 1, 0 }
  0x38   : > { %s546_s13 = scalar_lea.hbm %s3850_s5, %s3290_s9  ;;  %s3798_s1 = scalar_lea.sflag [#allocation10], %s3278_s14 }
  0x39   : > { %3849 = sst [smem:[#allocation33_spill]] %s3848_s2  ;;  %s547_s15 = sshll.u32 %s546_s13, 4  ;;  %s548_s15 = int_to_ptr.hbm [resolvable:$true] %s547_s15 }
  0x3a   : > { %2602 = dma.hbm_to_vmem [thread:$0]  (!%p3301_p7), %s548_s15, 1024, %s550_s12, %s3798_s1, %s3799_s24, %s3799_s24, %s3801_s28  }
  0x3b   : > { %s2537_s7 = sshll.u32 %s3106_s21, 4  ;;  %s603_s8 = scalar_lea.vmem [#allocation12], %s2348_s3 }
  0x3c   : > { %s608_s27 = scalar_lea.hbm %s3851_s10, %s2537_s7  ;;  %s611_s5 = sshll.u32 %s603_s8, 4  ;;  %s612_s5 = int_to_ptr.vmem [resolvable:$true] %s611_s5 }
  0x3d   : > { %s609_s2 = sshll.u32 %s608_s27, 4  ;;  %s3796_s12 = scalar_lea.sflag [#allocation13], %s3278_s14  ;;  %s610_s2 = int_to_ptr.hbm [resolvable:$true] %s609_s2 }
  0x3e   : > { %2608 = dma.hbm_to_vmem [thread:$0]  (!%p3301_p7), %s610_s2, 256, %s612_s5, %s3796_s12, %s3799_s24, %s3799_s24, %s3801_s28  }
  0x3f   : > { %s3346_s15 = sadd.s32 4294967295, %s3114_s23   ;;  %s2330_s8 = sadd.s32 4294967294, %s3114_s23  }
  0x40   : > { %s51_s3 = sadd.s32 1, %s3110_s22  ;;  %s58_s7 = sadd.s32 1, %s3094_s18 }
  0x41   : > { %s3911_s3 = smov (!%p3255_p1, %s51_s3), %s3110_s22  ;;  %p65_p11 = scmp.ne.s32.totalorder %s3094_s18, %s3090_s17 }
  0x42   : > { %p53_p12 = scmp.ge.s32.totalorder %s3911_s3, 2  ;;  %p71_p13 = scmp.ne.s32.totalorder %s3090_s17, %s3086_s16 }
  0x43   : > { %p3360_p2 = por %p66_p0, %p65_p11  ;;  %p72_p4 = scmp.eq.s32.totalorder %s3346_s15, 0 }
  0x44   : > { %s3913_s3 = smov (%p53_p12, %s3911_s3), 0  ;;  %p433_p0 = scmp.eq.s32.totalorder %s3346_s15, 3 }
  0x45   : > { %3853 = sst [smem:[#allocation34_spill]] %s3913_s3  ;;  %p3370_p6 = por %p72_p4, %p71_p13 }
  0x46   : > { %p3377_p1 = por %p149_p3, %p72_p4  ;;  %s55_s13 = ssub.s32 %s3110_s22, %s3913_s3 }
  0x47   : > { %p56_p8 = scmp.eq.s32.totalorder %s55_s13, 0  ;;  %p439_p9 = scmp.eq.s32.totalorder %s2330_s8, 3 }
  0x48   : > { %p3384_p12 = por %p433_p0, %p65_p11  ;;  %s459_s27 = sand.u32 1, %s3094_s18  }
  0x49   : > { %s3390_s12 = scalar_select %p56_p8, %s3094_s18, %s58_s7  }
  0x4a   : > { %s3856_s19 = scalar_select %p3384_p12, 1, 0 }
  0x4b   : > { %3858 = sst [smem:[#allocation36_spill]] %s3390_s12  ;;  %p3395_p5 = por %p439_p9, %p71_p13 }
  0x4c   : > { %3857 = sst [smem:[#allocation35_spill]] %s3856_s19  ;;  %s2333_s1 = sshll.u32 %s459_s27, 4 }
  0x4d   : > { %s3859_s29 = scalar_select %p3395_p5, 1, 0 }
  0x4e   : > { %s2532_s24 = sshll.u32 %s3110_s22, 4  ;;  %s3861_s0 = sld [smem:[#allocation39_spill]] }
  0x4f   : > { %3860 = sst [smem:[#allocation37_spill]] %s3859_s29  ;;  %s463_s3 = scalar_lea.vmem [#allocation3], %s2333_s1 }
  0x50   : > { %s471_s19 = sshll.u32 %s463_s3, 4  ;;  %p3862_p3 = scmp.lt.s32.totalorder %s3114_s23, 4  ;;  %s472_s19 = int_to_ptr.vmem [resolvable:$true] %s471_s19 }
  0x51   : > { %s3863_s4 = sld [smem:[#allocation43_spill]]  ;;  %s460_s18 = scalar_lea.sflag [#allocation4], %s459_s27 }
  0x52   : > { %p2591_p11 = pnand %p3862_p3, %p3360_p2  ;;  %s3118_s29 = smov 128  }
  0x53   : > { %s3119_s10 = smov 8   ;;  %s519_s28 = scalar_lea.vmem [#allocation8], %s3287_s11 }
  0x54   : > { %s468_s13 = scalar_lea.hbm %s3861_s0, %s2532_s24  ;;  %s527_s1 = sshll.u32 %s519_s28, 4  ;;  %s528_s1 = int_to_ptr.vmem [resolvable:$true] %s527_s1 }
  0x55   : > { %s469_s8 = sshll.u32 %s468_s13, 4  ;;  %s3864_s3 = smov 4   ;;  %s470_s8 = int_to_ptr.hbm [resolvable:$true] %s469_s8 }
  0x56   : > { %2593 = dma.hbm_to_vmem [thread:$0]  (!%p2591_p11), %s470_s8, 256, %s472_s19, %s460_s18, %s3118_s29, %s3118_s29, %s3119_s10  }
  0x57   : > { %s524_s22 = scalar_lea.hbm %s3863_s4, %s3290_s9  ;;  %s3865_s5 = smov 64  }
  0x58   : > { %s525_s24 = sshll.u32 %s524_s22, 4  ;;  %s3866_s13 = scalar_lea.sflag [#allocation7], %s3278_s14  ;;  %s526_s24 = int_to_ptr.hbm [resolvable:$true] %s525_s24 }
  0x59   : > { %2599 = dma.hbm_to_vmem [thread:$0]  (!%p3301_p7), %s526_s24, 1024, %s528_s1, %s3866_s13, %s3865_s5, %s3865_s5, %s3864_s3  }
  0x5a   : > { %s2345_s9 = sshll.u32 %s3281_s20, 5  ;;  %s2536_s12 = sshll.u32 %s3106_s21, 5 }
  0x5b   : > { %s3867_s6 = sld [smem:[#allocation45_spill]]  ;;  %s563_s22 = scalar_lea.vmem [#allocation11], %s2345_s9 }
  0x5c   : > { %s571_s11 = sshll.u32 %s563_s22, 4  ;;  %s3868_s19 = scalar_lea.sflag [#allocation10], %s3278_s14  ;;  %s572_s11 = int_to_ptr.vmem [resolvable:$true] %s571_s11 }
  0x5d   : > { %s3869_s10 = sld [smem:[#allocation51_spill]]  ;;  %s631_s28 = scalar_lea.vmem [#allocation14], %s2345_s9 }
  0x5e   : > { %s639_s1 = sshll.u32 %s631_s28, 4  ;;  %s640_s1 = int_to_ptr.vmem [resolvable:$true] %s639_s1 }
  0x61   : > { %s568_s0 = scalar_lea.hbm %s3867_s6, %s2536_s12 }
  0x62   : > { %s569_s18 = sshll.u32 %s568_s0, 4  ;;  %s3870_s0 = scalar_lea.sflag [#allocation13], %s3278_s14  ;;  %s570_s18 = int_to_ptr.hbm [resolvable:$true] %s569_s18 }
  0x63   : > { %2605 = dma.hbm_to_vmem [thread:$0]  (!%p3301_p7), %s570_s18, 512, %s572_s11, %s3868_s19, %s3865_s5, %s3865_s5, %s3864_s3  }
  0x64   : > { %s636_s20 = scalar_lea.hbm %s3869_s10, %s2536_s12  ;;  %657 = sbr.rel (%p3315_p10) target bundleno = 1927 (0x787), region = 76 }
  0x65   : > { %s637_s24 = sshll.u32 %s636_s20, 4  ;;  %s638_s24 = int_to_ptr.hbm [resolvable:$true] %s637_s24 }
  0x66   : > { %2611 = dma.hbm_to_vmem [thread:$0]  (!%p3301_p7), %s638_s24, 512, %s640_s1, %s3870_s0, %s3865_s5, %s3865_s5, %s3864_s3  }
  0x69   : > { %s3444_s27 = sand.u32 1, %s3090_s17  }
  0x6a   : > { %s3809_s9 = sshll.u32 %s3444_s27, 4  ;;  %s660_s12 = scalar_lea.sflag [#allocation4], %s3444_s27 }
  0x6b   : > { %s3450_s7 = scalar_lea.vmem [#allocation3], %s3809_s9 }
  0x6c   : > { %3053 = dma.done.wait (%p3370_p6), %s660_s12, 256  }
  0x6d   : > { %3055 = vsyncadd (%p3370_p6), %s660_s12, 4294967040  ;;  %s669_s14 = sand.u32 1, %s3346_s15   ;;  %s671_s26 = sand.u32 1, %s3078_s30  }
  0x6e   : > { %s2356_s3 = sshll.u32 %s671_s26, 6  ;;  %s670_s5 = scalar_lea.sflag [#allocation7], %s669_s14 }
  0x6f   : > { %s3458_s18 = scalar_lea.vmem [#allocation6], %s2356_s3 }
  0x70   : > { %3057 = dma.done.wait (%p3377_p1), %s670_s5, 2048  }
  0x71   : > { %3059 = vsyncadd (%p3377_p1), %s670_s5, 4294965248  ;;  %s3464_s22 = scalar_lea.vmem [#allocation8], %s2356_s3  ;;  %s690_s11 = scalar_lea.sflag [#allocation10], %s669_s14 }
  0x72   : > { %s3466_s25 = scalar_lea.vmem [#allocation9], %s2356_s3 }
  0x73   : > { %3061 = dma.done.wait (%p3377_p1), %s690_s11, 1536  }
  0x74   : > { %3063 = vsyncadd (%p3377_p1), %s690_s11, 4294965760  ;;  %s2359_s15 = sshll.u32 %s671_s26, 5  ;;  %s2360_s19 = sshll.u32 %s671_s26, 4 }
  0x75   : > { %s3472_s29 = scalar_lea.vmem [#allocation11], %s2359_s15  ;;  %s710_s8 = scalar_lea.sflag [#allocation13], %s669_s14 }
  0x76   : > { %s3474_s10 = scalar_lea.vmem [#allocation12], %s2360_s19 }
  0x77   : > { %3872 = sst [smem:[#allocation38_spill]] %s3474_s10 }
  0x78   : > { %3065 = dma.done.wait (%p3377_p1), %s710_s8, 768  }
  0x79   : > { %3067 = vsyncadd (%p3377_p1), %s710_s8, 4294966528  ;;  %s3873_s20 = sld [smem:[#allocation26_spill]]  ;;  %s3881_s3 = sshll.u32 %s3444_s27, 4 }
  0x7a   : > { %s3875_s14 = sld [smem:[#allocation41_spill]]  ;;  %s3516_s5 = scalar_lea.vmem [#allocation15], %s3881_s3 }
  0x7b   : > { %s3876_s11 = sld [smem:[#allocation46_spill]] }
  0x7c   : > { %s3877_s4 = sld [smem:[#allocation47_spill]] }
  0x7d   : > { %s3878_s21 = sld [smem:[#allocation48_spill]] }
  0x7e   : > { %s3879_s23 = sld [smem:[#allocation50_spill]] }
  0x7f   : > { %p820_p7 = scmp.lt.s32.totalorder %s3873_s20, 1  ;;  %s3880_s12 = sld [smem:[#allocation52_spill]] }
  0x80   : > { %p2363_p10 = scmp.ne.s32.totalorder %s3873_s20, 0 }
  0x81   : > { %s3482_s24 = scalar_select %p820_p7, %s3873_s20, 1 }
  0x82   : > { %845 = sbr.rel (%p2363_p10) target bundleno = 138 (0x8a), region = 108 }
  0x83   : > { %s825_s26 = scalar_lea.vmem %s3875_s14, %s3482_s24  ;;  %s828_s19 = scalar_lea.vmem %s3876_s11, %s3482_s24 }
  0x84   : > { %s831_s6 = scalar_lea.vmem %s3877_s4, %s3482_s24  ;;  %s834_s17 = scalar_lea.vmem %s3878_s21, %s3482_s24 }
  0x85   : > { %s837_s0 = scalar_lea.vmem %s3879_s23, %s3482_s24  ;;  %s840_s2 = scalar_lea.vmem %s3880_s12, %s3482_s24 }
  0x86   : > { %s3512_s14 = scalar_lea.vmem [#allocation14], %s2359_s15 }
  0x87   : > { %v846_v0 = vld [vmem:[%s3450_s7] sm:$0xff]  ;;  %vm848_vm0 = vcmask 261120   ;;  %v847_v1 = vld [vmem:[%s3450_s7 + $0x8] sm:$0xff] }
  0x88   : > { %849 = vst.msk [vmem:[#allocation2] sm:$0xff] %vm848_vm0, %v846_v0 }
  0x89   : > { %850 = vst.msk [vmem:[#allocation2 + $0x8] sm:$0xff] %vm848_vm0, %v847_v1 }
  0x8a PF: > { %vm855_vm1 = vcmask 261120   ;;  %v3120_v6 = vmov 32.0   ;;  %v2540_v25 = vld [vmem:[%s3458_s18 + $0x8] sm:$0xff]  ;;  %v2542_v26 = vld [vmem:[%s3458_s18 + $0x18] sm:$0xff]  ;;  %v2539_v30 = vld [vmem:[%s3458_s18] sm:$0xff]  ;;  %s3882_s16 = sld [smem:[#allocation40_spill]] }
  0x8b   : > { %2720 = vrcp.f32 %v3120_v6  ;;  %v2544_v27 = vld [vmem:[%s3458_s18 + $0x28] sm:$0xff]  ;;  %v2546_v29 = vld [vmem:[%s3458_s18 + $0x38] sm:$0xff]  ;;  %961 = vmatpush.bf16.msra.mxu0 %v2540_v25  ;;  %987 = vmatpush.bf16.msra.mxu1 %v2542_v26  ;;  %v2541_v31 = vld [vmem:[%s3458_s18 + $0x10] sm:$0xff]  ;;  %vm1313_vm9 = vcmask 130048   ;;  %s3886_s15 = sld [smem:[#allocation38_spill]] }
  0x8c   : > { %1013 = vmatpush.bf16.msra.mxu2 %v2544_v27  ;;  %1039 = vmatpush.bf16.msra.mxu3 %v2546_v29  ;;  %v2543_v32 = vld [vmem:[%s3458_s18 + $0x20] sm:$0xff]  ;;  %v2545_v33 = vld [vmem:[%s3458_s18 + $0x30] sm:$0xff]  ;;  %v2548_v39 = vld [vmem:[%s3464_s22 + $0x8] sm:$0xff] }
  0x8d   : > { %v2550_v40 = vld [vmem:[%s3464_s22 + $0x18] sm:$0xff]  ;;  %v2552_v41 = vld [vmem:[%s3464_s22 + $0x28] sm:$0xff]  ;;  %v2547_v44 = vld [vmem:[%s3464_s22] sm:$0xff] }
  0x8e   : > { %v2554_v42 = vld [vmem:[%s3464_s22 + $0x38] sm:$0xff]  ;;  %v2549_v45 = vld [vmem:[%s3464_s22 + $0x10] sm:$0xff]  ;;  %v2551_v46 = vld [vmem:[%s3464_s22 + $0x20] sm:$0xff] }
  0x8f   : > { %v3521_v2 = vld [vmem:[#allocation2] sm:$0xff]  ;;  %962 = vmatpush.bf16.msra.mxu0 %v2539_v30  ;;  %988 = vmatpush.bf16.msra.mxu1 %v2541_v31 }
  0x90   : > { %v856_v3 = vsel %vm855_vm1, %v3521_v2, 0.0  ;;  %v3525_v4 = vld [vmem:[#allocation2 + $0x8] sm:$0xff]  ;;  %1014 = vmatpush.bf16.msra.mxu2 %v2543_v32  ;;  %1040 = vmatpush.bf16.msra.mxu3 %v2545_v33  ;;  %v2553_v47 = vld [vmem:[%s3464_s22 + $0x30] sm:$0xff]  ;;  %s3883_s21 = scalar_lea.vmem %s3882_s16, %s3482_s24 }
  0x91   : > { %857 = vadd.xlane.f32.xlu0 %v856_v3  ;;  %v859_v5 = vsel %vm855_vm1, %v3525_v4, 0.0  ;;  %v2721_v7 = vpop.eup %2720  ;;  %v2713_v55 = vld [vmem:[%s3883_s21] ss:$0 sm:$0xff] }
  0x92   : > { %v863_v8 = vmul.f32 32.0, %v2721_v7  ;;  %vm867_vm2 = vweird.f32 %v2721_v7  ;;  %v2714_v59 = vld [vmem:[%s825_s26] ss:$0 sm:$0xff] }
  0x93   : > { %1081 = vmatpush.bf16.msrb.mxu0 %v2548_v39  ;;  %1107 = vmatpush.bf16.msrb.mxu1 %v2550_v40 }
  0x94   : > { %v864_v9 = vsub.f32 1.0, %v863_v8  ;;  %1133 = vmatpush.bf16.msrb.mxu2 %v2552_v41  ;;  %1159 = vmatpush.bf16.msrb.mxu3 %v2554_v42 }
  0x96   : > { %v865_v10 = vmul.f32 %v2721_v7, %v864_v9 }
  0x97   : > { %1082 = vmatpush.bf16.msrb.mxu0 %v2547_v44  ;;  %1108 = vmatpush.bf16.msrb.mxu1 %v2549_v45 }
  0x98   : > { %v866_v11 = vadd.f32 %v2721_v7, %v865_v10  ;;  %1134 = vmatpush.bf16.msrb.mxu2 %v2551_v46  ;;  %1160 = vmatpush.bf16.msrb.mxu3 %v2553_v47  ;;  %v2556_v10 = vld [vmem:[%s3466_s25 + $0x8] sm:$0xff] }
  0x99   : > { %860 = vadd.xlane.f32.xlu0 %v859_v5 }
  0x9a   : > { %v3529_v12 = vsel %vm867_vm2, %v2721_v7, %v866_v11  ;;  %v2558_v11 = vld [vmem:[%s3466_s25 + $0x18] sm:$0xff] }
 0x104   : > { %v858_v13 = vpop.xlane.xlu0 %857 }
 0x105   : > { %v869_v14 = vmul.f32 %v3529_v12, %v858_v13  ;;  %v2560_v13 = vld [vmem:[%s3466_s25 + $0x28] sm:$0xff] }
 0x107   : > { %v3533_v15 = vsub.f32 %v3521_v2, %v869_v14  ;;  %v2562_v14 = vld [vmem:[%s3466_s25 + $0x38] sm:$0xff] }
 0x109   : > { %v873_v16 = vmul.f32 %v3533_v15, %v3533_v15 }
 0x10b   : > { %v875_v17 = vsel %vm855_vm1, %v873_v16, 0.0  ;;  %v2557_v16 = vld [vmem:[%s3466_s25 + $0x10] sm:$0xff] }
 0x10c   : > { %876 = vadd.xlane.f32.xlu1 %v875_v17  ;;  %v861_v18 = vpop.xlane.xlu0 %860  ;;  %v2559_v17 = vld [vmem:[%s3466_s25 + $0x20] sm:$0xff] }
 0x10d   : > { %v870_v19 = vmul.f32 %v3529_v12, %v861_v18  ;;  %v2561_v18 = vld [vmem:[%s3466_s25 + $0x30] sm:$0xff] }
 0x10f   : > { %v3540_v20 = vsub.f32 %v3525_v4, %v870_v19 }
 0x111   : > { %v874_v21 = vmul.f32 %v3540_v20, %v3540_v20 }
 0x113   : > { %v878_v22 = vsel %vm855_vm1, %v874_v21, 0.0 }
 0x114   : > { %879 = vadd.xlane.f32.xlu1 %v878_v22 }
 0x17f   : > { %v877_v23 = vpop.xlane.xlu1 %876 }
 0x180   : > { %v881_v24 = vmul.f32 %v877_v23, %v3529_v12 }
 0x182   : > { %v883_v28 = vadd.f32 1e-05, %v881_v24 }
 0x184   : > { %2722 = vrsqrt.f32 %v883_v28  ;;  %vm891_vm4 = vweird.f32 %v883_v28 }
 0x187   : > { %v880_v34 = vpop.xlane.xlu1 %879 }
 0x188   : > { %v882_v35 = vmul.f32 %v880_v34, %v3529_v12 }
 0x18a   : > { %v2723_v36 = vpop.eup %2722  ;;  %v884_v37 = vadd.f32 1e-05, %v882_v35 }
 0x18b   : > { %v886_v38 = vmul.f32 %v2723_v36, %v883_v28  ;;  %vm892_vm3 = vweird.f32 %v2723_v36 }
 0x18c   : > { %2724 = vrsqrt.f32 %v884_v37  ;;  %vm893_vm5 = vmor %vm891_vm4, %vm892_vm3  ;;  %vm901_vm7 = vweird.f32 %v884_v37 }
 0x18d   : > { %v887_v43 = vmul.f32 %v2723_v36, %v886_v38 }
 0x18f   : > { %v888_v48 = vmul.f32 0.5, %v887_v43 }
 0x191   : > { %v889_v49 = vsub.f32 1.5, %v888_v48 }
 0x192   : > { %v2725_v50 = vpop.eup %2724 }
 0x193   : > { %v890_v51 = vmul.f32 %v2723_v36, %v889_v49  ;;  %v896_v52 = vmul.f32 %v2725_v50, %v884_v37  ;;  %vm902_vm6 = vweird.f32 %v2725_v50 }
 0x194   : > { %vm903_vm8 = vmor %vm901_vm7, %vm902_vm6 }
 0x195   : > { %v894_v53 = vsel %vm893_vm5, %v2723_v36, %v890_v51  ;;  %v897_v54 = vmul.f32 %v2725_v50, %v896_v52 }
 0x196   : > { %v905_v56 = vmul.f32 %v894_v53, %v3533_v15  ;;  %v2555_v15 = vld [vmem:[%s3466_s25] sm:$0xff] }
 0x197   : > { %v898_v57 = vmul.f32 0.5, %v897_v54 }
 0x198   : > { %v910_v60 = vmul.f32 %v2713_v55, %v905_v56 }
 0x199   : > { %v899_v58 = vsub.f32 1.5, %v898_v57 }
 0x19a   : > { %v915_v63 = vadd.f32 %v2714_v59, %v910_v60 }
 0x19b   : > { %v900_v61 = vmul.f32 %v2725_v50, %v899_v58 }
 0x19c   : > { %v917_v3 = vpack.c.bf16 %v915_v63, %v915_v63 }
 0x19d   : > { %v904_v62 = vsel %vm903_vm8, %v2725_v50, %v900_v61 }
 0x19e   : > { %v906_v0 = vmul.f32 %v904_v62, %v3540_v20  ;;  %v937_v7 = vunpack.c.l.b16 %v917_v3 }
 0x1a0   : > { %v911_v1 = vmul.f32 %v2713_v55, %v906_v0 }
 0x1a2   : > { %v916_v5 = vadd.f32 %v2714_v59, %v911_v1 }
 0x1a4   : > { %v918_v6 = vpack.c.bf16 %v916_v5, %v916_v5 }
 0x1a6   : > { %v938_v8 = vunpack.c.l.b16 %v918_v6 }
 0x1a8   : > { %v939_v9 = vpack.c.b16 %v938_v8, %v937_v7 }
 0x1aa   : > { %2372 = vmatmul.msk.bf16.vlgmr.msra.gmra.mxu0 %vm855_vm1, %v939_v9  ;;  %2381 = vmatmul.msk.bf16.vlgmr.msra.gmra.mxu1 %vm855_vm1, %v939_v9 }
 0x1ab   : > { %2390 = vmatmul.msk.bf16.vlgmr.msra.gmra.mxu2 %vm855_vm1, %v939_v9  ;;  %2399 = vmatmul.msk.bf16.vlgmr.msra.gmra.mxu3 %vm855_vm1, %v939_v9 }
 0x1ac   : > { %1201 = vmatpush.bf16.msra.mxu0 %v2556_v10  ;;  %1227 = vmatpush.bf16.msra.mxu1 %v2558_v11 }
 0x1ad   : > { %1253 = vmatpush.bf16.msra.mxu2 %v2560_v13  ;;  %1279 = vmatpush.bf16.msra.mxu3 %v2562_v14 }
 0x1b0   : > { %1202 = vmatpush.bf16.msra.mxu0 %v2555_v15  ;;  %1228 = vmatpush.bf16.msra.mxu1 %v2557_v16 }
 0x1b1   : > { %1254 = vmatpush.bf16.msra.mxu2 %v2559_v17  ;;  %1280 = vmatpush.bf16.msra.mxu3 %v2561_v18 }
 0x1ba   : > { %2408 = vmatmul.msk.bf16.vlgmr.msrb.gmra.mxu0 %vm855_vm1, %v939_v9  ;;  %2417 = vmatmul.msk.bf16.vlgmr.msrb.gmra.mxu1 %vm855_vm1, %v939_v9 }
 0x1bb   : > { %2426 = vmatmul.msk.bf16.vlgmr.msrb.gmra.mxu2 %vm855_vm1, %v939_v9  ;;  %2435 = vmatmul.msk.bf16.vlgmr.msrb.gmra.mxu3 %vm855_vm1, %v939_v9 }
 0x1ca   : > { %2444 = vmatmul.msk.bf16.vlgmr.msra.gmra.mxu0 %vm855_vm1, %v939_v9  ;;  %2453 = vmatmul.msk.bf16.vlgmr.msra.gmra.mxu1 %vm855_vm1, %v939_v9 }
 0x1cb   : > { %2462 = vmatmul.msk.bf16.vlgmr.msra.gmra.mxu2 %vm855_vm1, %v939_v9  ;;  %2471 = vmatmul.msk.bf16.vlgmr.msra.gmra.mxu3 %vm855_vm1, %v939_v9 }
 0x227   : > { %v964_v19 = vpop.f32.mrf.mxu0  ;;  %v990_v20 = vpop.f32.mrf.mxu1 }
 0x228   : > { %v1287_v47 = vpack.c.bf16 %v964_v19, %v964_v19  ;;  %v1289_v48 = vpack.c.bf16 %v990_v20, %v990_v20 }
 0x22a   : > { %v1305_v63 = vunpack.c.l.b16 %v1287_v47  ;;  %v1336_v0 = vunpack.c.l.b16 %v1289_v48 }
 0x22e   : > { %v3595_v21 = vpop.f32.mrf.mxu2  ;;  %v3597_v22 = vpop.f32.mrf.mxu3 }
 0x22f   : > { %v966_v23 = vpop.f32.mrf.mxu0  ;;  %v992_v24 = vpop.f32.mrf.mxu1  ;;  %v1291_v7 = vpack.c.bf16 %v3595_v21, %v3595_v21  ;;  %v1293_v8 = vpack.c.bf16 %v3597_v22, %v3597_v22 }
 0x230   : > { %v1288_v41 = vpack.c.bf16 %v966_v23, %v966_v23  ;;  %v1290_v42 = vpack.c.bf16 %v992_v24, %v992_v24 }
 0x231   : > { %v1366_v24 = vunpack.c.l.b16 %v1291_v7 }
 0x232   : > { %v1306_v57 = vunpack.c.l.b16 %v1288_v41  ;;  %v1337_v58 = vunpack.c.l.b16 %v1290_v42 }
 0x234   : > { %v1307_v9 = vpack.c.b16 %v1306_v57, %v1305_v63  ;;  %v1338_v10 = vpack.c.b16 %v1337_v58, %v1336_v0 }
 0x236   : > { %v1018_v25 = vpop.f32.mrf.mxu2  ;;  %v1044_v26 = vpop.f32.mrf.mxu3 }
 0x237   : > { %v1084_v27 = vpop.f32.mrf.mxu0  ;;  %v1110_v28 = vpop.f32.mrf.mxu1  ;;  %v1292_v1 = vpack.c.bf16 %v1018_v25, %v1018_v25  ;;  %v1294_v3 = vpack.c.bf16 %v1044_v26, %v1044_v26  ;;  %v1396_v25 = vunpack.c.l.b16 %v1293_v8 }
 0x238   : > { %v1295_v29 = vpack.c.bf16 %v1084_v27, %v1084_v27  ;;  %v1297_v30 = vpack.c.bf16 %v1110_v28, %v1110_v28 }
 0x239   : > { %v1367_v18 = vunpack.c.l.b16 %v1292_v1  ;;  %v1397_v19 = vunpack.c.l.b16 %v1294_v3 }
 0x23a   : > { %v1310_v37 = vunpack.c.l.b16 %v1295_v29  ;;  %v1341_v38 = vunpack.c.l.b16 %v1297_v30 }
 0x23b   : > { %v1368_v30 = vpack.c.b16 %v1367_v18, %v1366_v24 }
 0x23e   : > { %v1136_v31 = vpop.f32.mrf.mxu2  ;;  %v1162_v32 = vpop.f32.mrf.mxu3 }
 0x23f   : > { %v1086_v33 = vpop.f32.mrf.mxu0  ;;  %v1112_v34 = vpop.f32.mrf.mxu1  ;;  %v1299_v45 = vpack.c.bf16 %v1136_v31, %v1136_v31  ;;  %v1301_v46 = vpack.c.bf16 %v1162_v32, %v1162_v32  ;;  %v1398_v31 = vpack.c.b16 %v1397_v19, %v1396_v25 }
 0x240   : > { %v1296_v35 = vpack.c.bf16 %v1086_v33, %v1086_v33  ;;  %v1298_v36 = vpack.c.bf16 %v1112_v34, %v1112_v34 }
 0x241   : > { %v1371_v59 = vunpack.c.l.b16 %v1299_v45  ;;  %v1401_v60 = vunpack.c.l.b16 %v1301_v46 }
 0x242   : > { %v1311_v39 = vunpack.c.l.b16 %v1296_v35  ;;  %v1342_v40 = vunpack.c.l.b16 %v1298_v36 }
 0x244   : > { %v1312_v43 = vpack.c.b16 %v1311_v39, %v1310_v37  ;;  %v1343_v44 = vpack.c.b16 %v1342_v40, %v1341_v38 }
 0x246   : > { %v1138_v49 = vpop.f32.mrf.mxu2  ;;  %v1164_v50 = vpop.f32.mrf.mxu3  ;;  %v1318_v51 = vsel %vm1313_vm9, %v1312_v43, 0  ;;  %v1348_v52 = vsel %vm1313_vm9, %v1343_v44, 0 }
 0x247   : > { %v1300_v53 = vpack.c.bf16 %v1138_v49, %v1138_v49  ;;  %v1302_v54 = vpack.c.bf16 %v1164_v50, %v1164_v50  ;;  %v1204_v55 = vpop.f32.mrf.mxu0  ;;  %v1230_v56 = vpop.f32.mrf.mxu1  ;;  %1327 = vmatpush.bf16.xpose.msrb.mxu0 %v1318_v51  ;;  %1357 = vmatpush.bf16.xpose.msrb.mxu1 %v1348_v52 }
 0x248   : > { %v1528_v14 = vpack.c.bf16 %v1204_v55, %v1204_v55  ;;  %v1530_v15 = vpack.c.bf16 %v1230_v56, %v1230_v56 }
 0x249   : > { %v1372_v61 = vunpack.c.l.b16 %v1300_v53  ;;  %v1402_v62 = vunpack.c.l.b16 %v1302_v54 }
 0x24a   : > { %v1543_v26 = vunpack.c.l.b16 %v1528_v14  ;;  %v1571_v27 = vunpack.c.l.b16 %v1530_v15 }
 0x24b   : > { %v1373_v5 = vpack.c.b16 %v1372_v61, %v1371_v59  ;;  %v1403_v6 = vpack.c.b16 %v1402_v62, %v1401_v60 }
 0x24d   : > { %v1378_v11 = vsel %vm1313_vm9, %v1373_v5, 0  ;;  %v1408_v13 = vsel %vm1313_vm9, %v1403_v6, 0 }
 0x24e   : > { %v1256_v16 = vpop.f32.mrf.mxu2  ;;  %v1282_v17 = vpop.f32.mrf.mxu3  ;;  %1387 = vmatpush.bf16.xpose.msrb.mxu2 %v1378_v11  ;;  %1417 = vmatpush.bf16.xpose.msrb.mxu3 %v1408_v13 }
 0x24f   : > { %2472 = vmatmul.msk.bf16.vlgmr.msrb.gmra.mxu0 %vm1313_vm9, %v1307_v9  ;;  %2473 = vmatmul.msk.bf16.vlgmr.msrb.gmra.mxu1 %vm1313_vm9, %v1338_v10  ;;  %v1206_v20 = vpop.f32.mrf.mxu0  ;;  %v1232_v21 = vpop.f32.mrf.mxu1  ;;  %v1532_v34 = vpack.c.bf16 %v1256_v16, %v1256_v16  ;;  %v1534_v35 = vpack.c.bf16 %v1282_v17, %v1282_v17 }
 0x250   : > { %v1529_v22 = vpack.c.bf16 %v1206_v20, %v1206_v20  ;;  %v1531_v23 = vpack.c.bf16 %v1232_v21, %v1232_v21 }
 0x251   : > { %v1599_v40 = vunpack.c.l.b16 %v1532_v34  ;;  %v1627_v41 = vunpack.c.l.b16 %v1534_v35 }
 0x252   : > { %v1544_v28 = vunpack.c.l.b16 %v1529_v22  ;;  %v1572_v29 = vunpack.c.l.b16 %v1531_v23 }
 0x254   : > { %v1545_v32 = vpack.c.b16 %v1544_v28, %v1543_v26  ;;  %v1573_v33 = vpack.c.b16 %v1572_v29, %v1571_v27 }
 0x255   : > { %2474 = vmatmul.msk.bf16.vlgmr.msrb.gmra.mxu2 %vm1313_vm9, %v1368_v30  ;;  %2475 = vmatmul.msk.bf16.vlgmr.msrb.gmra.mxu3 %vm1313_vm9, %v1398_v31 }
 0x256   : > { %v1258_v36 = vpop.f32.mrf.mxu2  ;;  %v1284_v37 = vpop.f32.mrf.mxu3  ;;  %1557 = vmatpush.bf16.msra.mxu0 %v1545_v32  ;;  %1585 = vmatpush.bf16.msra.mxu1 %v1573_v33 }
 0x257   : > { %v1533_v38 = vpack.c.bf16 %v1258_v36, %v1258_v36  ;;  %v1535_v39 = vpack.c.bf16 %v1284_v37, %v1284_v37 }
 0x259   : > { %v1600_v42 = vunpack.c.l.b16 %v1533_v38  ;;  %v1628_v43 = vunpack.c.l.b16 %v1535_v39 }
 0x25b   : > { %v1601_v44 = vpack.c.b16 %v1600_v42, %v1599_v40  ;;  %v1629_v45 = vpack.c.b16 %v1628_v43, %v1627_v41 }
 0x25d   : > { %1613 = vmatpush.bf16.msra.mxu2 %v1601_v44  ;;  %1641 = vmatpush.bf16.msra.mxu3 %v1629_v45 }
 0x2cc   : > { %v1329_v46 = vpop.f32.mrf.mxu0  ;;  %v1359_v59 = vpop.f32.mrf.mxu1 }
 0x2cd   : > { %v1424_v63 = vmul.f32 0.25, %v1329_v46  ;;  %v1426_v0 = vmul.f32 0.25, %v1359_v59 }
 0x2cf   : > { %v1438_v1 = vsel %vm1313_vm9, %v1426_v0, -inf  ;;  %v1432_v3 = vsel %vm1313_vm9, %v1424_v63, -inf }
 0x2d4   : > { %v1331_v53 = vpop.f32.mrf.mxu0  ;;  %v1361_v5 = vpop.f32.mrf.mxu1 }
 0x2d5   : > { %v1425_v54 = vmul.f32 0.25, %v1331_v53  ;;  %v1427_v6 = vmul.f32 0.25, %v1361_v5 }
 0x2d7   : > { %v1435_v62 = vsel %vm1313_vm9, %v1425_v54, -inf  ;;  %v1441_v7 = vsel %vm1313_vm9, %v1427_v6, -inf }
 0x2d8   : > { %v1389_v47 = vpop.f32.mrf.mxu2  ;;  %v1419_v48 = vpop.f32.mrf.mxu3 }
 0x2d9   : > { %v1428_v49 = vmul.f32 0.25, %v1389_v47  ;;  %v1430_v50 = vmul.f32 0.25, %v1419_v48 }
 0x2db   : > { %v1450_v51 = vsel %vm1313_vm9, %v1430_v50, -inf  ;;  %v1444_v52 = vsel %vm1313_vm9, %v1428_v49, -inf }
 0x2dc   : > { %1451 = vmax.xlane.f32.xlu0 %v1450_v51  ;;  %1445 = vmax.xlane.f32.xlu2 %v1444_v52 }
 0x2e0   : > { %v1391_v55 = vpop.f32.mrf.mxu2  ;;  %v1421_v56 = vpop.f32.mrf.mxu3 }
 0x2e1   : > { %v1429_v57 = vmul.f32 0.25, %v1391_v55  ;;  %v1431_v58 = vmul.f32 0.25, %v1421_v56 }
 0x2e3   : > { %v1453_v60 = vsel %vm1313_vm9, %v1431_v58, -inf  ;;  %v1447_v61 = vsel %vm1313_vm9, %v1429_v57, -inf }
 0x2e4   : > { %1454 = vmax.xlane.f32.xlu1 %v1453_v60  ;;  %1448 = vmax.xlane.f32.xlu2 %v1447_v61 }
 0x2e5   : > { %1436 = vmax.xlane.f32.xlu0 %v1435_v62 }
 0x2ec   : > { %1439 = vmax.xlane.f32.xlu1 %v1438_v1  ;;  %1433 = vmax.xlane.f32.xlu2 %v1432_v3 }
 0x2f4   : > { %1442 = vmax.xlane.f32.xlu2 %v1441_v7 }
 0x34f   : > { %v1452_v8 = vpop.xlane.xlu0 %1451  ;;  %v1446_v9 = vpop.xlane.xlu2 %1445 }
 0x350   : > { %v1462_v10 = vsub.f32 %v1430_v50, %v1452_v8  ;;  %v1460_v11 = vsub.f32 %v1428_v49, %v1446_v9 }
 0x352   : > { %v1476_v13 = vmul.f32 1.442695, %v1462_v10  ;;  %v1472_v14 = vmul.f32 1.442695, %v1460_v11 }
 0x354   : > { %2726 = vpow2.f32 %v1476_v13 }
 0x355   : > { %2728 = vpow2.f32 %v1472_v14 }
 0x357   : > { %v1455_v15 = vpop.xlane.xlu1 %1454  ;;  %v1449_v16 = vpop.xlane.xlu2 %1448 }
 0x358   : > { %v1463_v17 = vsub.f32 %v1431_v58, %v1455_v15  ;;  %v1461_v18 = vsub.f32 %v1429_v57, %v1449_v16  ;;  %v1437_v19 = vpop.xlane.xlu0 %1436 }
 0x359   : > { %v1457_v20 = vsub.f32 %v1425_v54, %v1437_v19 }
 0x35a   : > { %v2727_v21 = vpop.eup %2726  ;;  %v1478_v22 = vmul.f32 1.442695, %v1463_v17  ;;  %v1474_v23 = vmul.f32 1.442695, %v1461_v18 }
 0x35b   : > { %v2729_v24 = vpop.eup %2728  ;;  %v1466_v25 = vmul.f32 1.442695, %v1457_v20  ;;  %v1498_v26 = vsel %vm1313_vm9, %v2727_v21, 0.0 }
 0x35c   : > { %2730 = vpow2.f32 %v1478_v22  ;;  %1499 = vadd.xlane.f32.xlu2 %v1498_v26  ;;  %v1492_v27 = vsel %vm1313_vm9, %v2729_v24, 0.0 }
 0x35d   : > { %2732 = vpow2.f32 %v1474_v23  ;;  %1493 = vadd.xlane.f32.xlu0 %v1492_v27 }
 0x35e   : > { %2734 = vpow2.f32 %v1466_v25 }
 0x35f   : > { %v1440_v28 = vpop.xlane.xlu1 %1439  ;;  %v1434_v29 = vpop.xlane.xlu2 %1433 }
 0x360   : > { %v1458_v30 = vsub.f32 %v1426_v0, %v1440_v28  ;;  %v1456_v31 = vsub.f32 %v1424_v63, %v1434_v29 }
 0x362   : > { %v2731_v32 = vpop.eup %2730  ;;  %v1468_v33 = vmul.f32 1.442695, %v1458_v30  ;;  %v1464_v34 = vmul.f32 1.442695, %v1456_v31 }
 0x363   : > { %v2733_v35 = vpop.eup %2732  ;;  %v1501_v36 = vsel %vm1313_vm9, %v2731_v32, 0.0 }
 0x364   : > { %v2735_v37 = vpop.eup %2734  ;;  %2736 = vpow2.f32 %v1468_v33  ;;  %v1495_v38 = vsel %vm1313_vm9, %v2733_v35, 0.0  ;;  %v2566_v33 = vld [vmem:[%s3472_s29 + $0x18] sm:$0xff] }
 0x365   : > { %2738 = vpow2.f32 %v1464_v34  ;;  %1496 = vadd.xlane.f32.xlu1 %v1495_v38  ;;  %1502 = vadd.xlane.f32.xlu0 %v1501_v36  ;;  %v1483_v39 = vsel %vm1313_vm9, %v2735_v37, 0.0  ;;  %v2563_v34 = vld [vmem:[%s3472_s29] sm:$0xff] }
 0x366   : > { %1484 = vadd.xlane.f32.xlu2 %v1483_v39  ;;  %1769 = vmatpush.bf16.msrb.mxu3 %v2566_v33 }
 0x367   : > { %v1443_v40 = vpop.xlane.xlu2 %1442  ;;  %1685 = vmatpush.bf16.msrb.mxu0 %v2563_v34 }
 0x368   : > { %v1459_v41 = vsub.f32 %v1427_v6, %v1443_v40 }
 0x36a   : > { %v2737_v42 = vpop.eup %2736  ;;  %v1470_v43 = vmul.f32 1.442695, %v1459_v41 }
 0x36b   : > { %v2739_v44 = vpop.eup %2738  ;;  %v1486_v45 = vsel %vm1313_vm9, %v2737_v42, 0.0 }
 0x36c   : > { %2740 = vpow2.f32 %v1470_v43  ;;  %v1480_v46 = vsel %vm1313_vm9, %v2739_v44, 0.0 }
 0x36d   : > { %1481 = vadd.xlane.f32.xlu1 %v1480_v46  ;;  %1487 = vadd.xlane.f32.xlu0 %v1486_v45 }
 0x372   : > { %v2741_v47 = vpop.eup %2740 }
 0x373   : > { %v1489_v48 = vsel %vm1313_vm9, %v2741_v47, 0.0 }
 0x375   : > { %1490 = vadd.xlane.f32.xlu1 %v1489_v48 }
 0x3cf   : > { %v1500_v49 = vpop.xlane.xlu2 %1499 }
 0x3d0   : > { %v1494_v50 = vpop.xlane.xlu0 %1493 }
 0x3d1   : > { %2742 = vrcp.f32 %v1494_v50 }
 0x3d2   : > { %2744 = vrcp.f32 %v1500_v49 }
 0x3d7   : > { %v2743_v53 = vpop.eup %2742 }
 0x3d8   : > { %v1497_v51 = vpop.xlane.xlu1 %1496  ;;  %v1503_v52 = vpop.xlane.xlu0 %1502  ;;  %v1516_v56 = vmul.f32 %v2743_v53, %v2729_v24 }
 0x3d9   : > { %2746 = vrcp.f32 %v1497_v51  ;;  %v1485_v54 = vpop.xlane.xlu2 %1484  ;;  %v2745_v55 = vpop.eup %2744 }
 0x3da   : > { %2748 = vrcp.f32 %v1485_v54  ;;  %v1518_v57 = vmul.f32 %v2745_v55, %v2727_v21  ;;  %v1524_v60 = vpack.c.bf16 %v1516_v56, %v1516_v56 }
 0x3db   : > { %2750 = vrcp.f32 %v1503_v52 }
 0x3dc   : > { %v1526_v1 = vpack.c.bf16 %v1518_v57, %v1518_v57  ;;  %v1594_v6 = vunpack.c.l.b16 %v1524_v60 }
 0x3de   : > { %v1622_v10 = vunpack.c.l.b16 %v1526_v1 }
 0x3df   : > { %v2747_v58 = vpop.eup %2746 }
 0x3e0   : > { %v2749_v59 = vpop.eup %2748  ;;  %v1517_v61 = vmul.f32 %v2747_v58, %v2733_v35  ;;  %v1482_v62 = vpop.xlane.xlu1 %1481  ;;  %v2564_v35 = vld [vmem:[%s3472_s29 + $0x8] sm:$0xff] }
 0x3e1   : > { %v1488_v63 = vpop.xlane.xlu0 %1487  ;;  %v2751_v0 = vpop.eup %2750  ;;  %2752 = vrcp.f32 %v1482_v62  ;;  %v1513_v8 = vmul.f32 %v2749_v59, %v2735_v37  ;;  %1713 = vmatpush.bf16.msrb.mxu1 %v2564_v35 }
 0x3e2   : > { %v1525_v3 = vpack.c.bf16 %v1517_v61, %v1517_v61  ;;  %v1519_v5 = vmul.f32 %v2751_v0, %v2731_v32  ;;  %2754 = vrcp.f32 %v1488_v63  ;;  %v2565_v32 = vld [vmem:[%s3472_s29 + $0x10] sm:$0xff] }
 0x3e3   : > { %v1521_v15 = vpack.c.bf16 %v1513_v8, %v1513_v8  ;;  %1741 = vmatpush.bf16.msrb.mxu2 %v2565_v32 }
 0x3e4   : > { %v1595_v7 = vunpack.c.l.b16 %v1525_v3  ;;  %v1527_v9 = vpack.c.bf16 %v1519_v5, %v1519_v5 }
 0x3e5   : > { %v1539_v21 = vunpack.c.l.b16 %v1521_v15  ;;  %v2715_v15 = vld [vmem:[%s828_s19] ss:$0 sm:$0xff] }
 0x3e6   : > { %v1596_v11 = vpack.c.b16 %v1595_v7, %v1594_v6  ;;  %v1623_v13 = vunpack.c.l.b16 %v1527_v9 }
 0x3e7   : > { %v2753_v14 = vpop.eup %2752 }
 0x3e8   : > { %v1624_v16 = vpack.c.b16 %v1623_v13, %v1622_v10  ;;  %v1512_v17 = vmul.f32 %v2753_v14, %v2739_v44  ;;  %v1491_v18 = vpop.xlane.xlu1 %1490  ;;  %2478 = vmatmul.msk.bf16.vlgmr.msra.gmra.mxu2 %vm1313_vm9, %v1596_v11  ;;  %v2755_v19 = vpop.eup %2754 }
 0x3e9   : > { %2756 = vrcp.f32 %v1491_v18  ;;  %v1514_v23 = vmul.f32 %v2755_v19, %v2737_v42 }
 0x3ea   : > { %v1520_v20 = vpack.c.bf16 %v1512_v17, %v1512_v17  ;;  %2479 = vmatmul.msk.bf16.vlgmr.msra.gmra.mxu3 %vm1313_vm9, %v1624_v16 }
 0x3eb   : > { %v1522_v26 = vpack.c.bf16 %v1514_v23, %v1514_v23 }
 0x3ec   : > { %v1538_v22 = vunpack.c.l.b16 %v1520_v20 }
 0x3ed   : > { %v1566_v29 = vunpack.c.l.b16 %v1522_v26 }
 0x3ee   : > { %v1540_v24 = vpack.c.b16 %v1539_v21, %v1538_v22 }
 0x3ef   : > { %v2757_v25 = vpop.eup %2756 }
 0x3f0   : > { %v1515_v27 = vmul.f32 %v2757_v25, %v2741_v47  ;;  %2476 = vmatmul.msk.bf16.vlgmr.msra.gmra.mxu0 %vm1313_vm9, %v1540_v24 }
 0x3f2   : > { %v1523_v28 = vpack.c.bf16 %v1515_v27, %v1515_v27 }
 0x3f4   : > { %v1567_v30 = vunpack.c.l.b16 %v1523_v28 }
 0x3f6   : > { %v1568_v31 = vpack.c.b16 %v1567_v30, %v1566_v29 }
 0x3f8   : > { %2477 = vmatmul.msk.bf16.vlgmr.msra.gmra.mxu1 %vm1313_vm9, %v1568_v31 }
 0x46b   : > { %v1615_v36 = vpop.f32.mrf.mxu2 }
 0x46c   : > { %v1652_v39 = vpack.c.bf16 %v1615_v36, %v1615_v36 }
 0x46d   : > { %v1643_v37 = vpop.f32.mrf.mxu3  ;;  %v1559_v38 = vpop.f32.mrf.mxu0 }
 0x46e   : > { %v1654_v40 = vpack.c.bf16 %v1643_v37, %v1643_v37  ;;  %v1648_v42 = vpack.c.bf16 %v1559_v38, %v1559_v38  ;;  %v1722_v46 = vunpack.c.l.b16 %v1652_v39 }
 0x470   : > { %v1750_v51 = vunpack.c.l.b16 %v1654_v40  ;;  %v1666_v52 = vunpack.c.l.b16 %v1648_v42  ;;  %v2568_v40 = vld [vmem:[%s3886_s15 + $0x8] sm:$0xff] }
 0x471   : > { %1884 = vmatpush.bf16.msra.mxu0 %v2568_v40 }
 0x473   : > { %v1617_v41 = vpop.f32.mrf.mxu2 }
 0x474   : > { %v1653_v43 = vpack.c.bf16 %v1617_v41, %v1617_v41 }
 0x475   : > { %v1645_v44 = vpop.f32.mrf.mxu3  ;;  %v1561_v45 = vpop.f32.mrf.mxu0 }
 0x476   : > { %v1723_v47 = vunpack.c.l.b16 %v1653_v43  ;;  %v1655_v48 = vpack.c.bf16 %v1645_v44, %v1645_v44  ;;  %v1649_v49 = vpack.c.bf16 %v1561_v45, %v1561_v45  ;;  %v1587_v50 = vpop.f32.mrf.mxu1  ;;  %v2567_v44 = vld [vmem:[%s3886_s15] sm:$0xff] }
 0x477   : > { %v1650_v58 = vpack.c.bf16 %v1587_v50, %v1587_v50  ;;  %1885 = vmatpush.bf16.msra.mxu0 %v2567_v44 }
 0x478   : > { %v1724_v53 = vpack.c.b16 %v1723_v47, %v1722_v46  ;;  %v1751_v54 = vunpack.c.l.b16 %v1655_v48  ;;  %v1667_v55 = vunpack.c.l.b16 %v1649_v49 }
 0x479   : > { %v1694_v61 = vunpack.c.l.b16 %v1650_v58 }
 0x47a   : > { %v1752_v56 = vpack.c.b16 %v1751_v54, %v1750_v51  ;;  %v1668_v57 = vpack.c.b16 %v1667_v55, %v1666_v52  ;;  %2494 = vmatmul.msk.bf16.vlgmr.msrb.gmra.mxu2 %vm1313_vm9, %v1724_v53 }
 0x47c   : > { %2499 = vmatmul.msk.bf16.vlgmr.msrb.gmra.mxu3 %vm1313_vm9, %v1752_v56  ;;  %2484 = vmatmul.msk.bf16.vlgmr.msrb.gmra.mxu0 %vm1313_vm9, %v1668_v57 }
 0x47e   : > { %v1589_v59 = vpop.f32.mrf.mxu1 }
 0x47f   : > { %v1651_v60 = vpack.c.bf16 %v1589_v59, %v1589_v59 }
 0x481   : > { %v1695_v62 = vunpack.c.l.b16 %v1651_v60 }
 0x483   : > { %v1696_v63 = vpack.c.b16 %v1695_v62, %v1694_v61 }
 0x485   : > { %2489 = vmatmul.msk.bf16.vlgmr.msrb.gmra.mxu1 %vm1313_vm9, %v1696_v63  ;;  %v2717_v63 = vld [vmem:[%s834_s17] ss:$0 sm:$0xff] }
 0x4f9   : > { %v1687_v0 = vpop.f32.mrf.mxu0 }
 0x4fa   : > { %v1776_v6 = vsel %vm855_vm1, %v1687_v0, 0.0 }
 0x4fd   : > { %v1743_v1 = vpop.f32.mrf.mxu2 }
 0x4fe   : > { %v1779_v9 = vsel %vm855_vm1, %v1743_v1, 0.0 }
 0x4ff   : > { %v1771_v3 = vpop.f32.mrf.mxu3 }
 0x500   : > { %v1781_v11 = vsel %vm855_vm1, %v1771_v3, 0.0 }
 0x501   : > { %v1689_v13 = vpop.f32.mrf.mxu0 }
 0x502   : > { %v1715_v5 = vpop.f32.mrf.mxu1  ;;  %v1783_v19 = vsel %vm855_vm1, %v1689_v13, 0.0 }
 0x503   : > { %v1777_v7 = vsel %vm855_vm1, %v1715_v5, 0.0 }
 0x504   : > { %v1778_v8 = vadd.f32 %v1777_v7, %v1776_v6 }
 0x505   : > { %v1745_v16 = vpop.f32.mrf.mxu2 }
 0x506   : > { %v1780_v10 = vadd.f32 %v1779_v9, %v1778_v8  ;;  %v1786_v24 = vsel %vm855_vm1, %v1745_v16, 0.0  ;;  %v2718_v8 = vld [vmem:[%s837_s0] ss:$0 sm:$0xff]  ;;  %s3891_s0 = sld [smem:[#allocation26_spill]] }
 0x507   : > { %v1773_v21 = vpop.f32.mrf.mxu3 }
 0x508   : > { %v1782_v14 = vadd.f32 %v1781_v11, %v1780_v10  ;;  %v1788_v27 = vsel %vm855_vm1, %v1773_v21, 0.0 }
 0x50a   : > { %v1717_v17 = vpop.f32.mrf.mxu1  ;;  %v1790_v18 = vadd.f32 %v1782_v14, %v3521_v2 }
 0x50b   : > { %v1784_v20 = vsel %vm855_vm1, %v1717_v17, 0.0 }
 0x50c   : > { %v1785_v22 = vadd.f32 %v1784_v20, %v1783_v19  ;;  %v3651_v23 = vadd.f32 %v2715_v15, %v1790_v18  ;;  %p2526_p13 = scmp.ne.s32.totalorder %s3891_s0, 1 }
 0x50e   : > { %v1787_v25 = vadd.f32 %v1786_v24, %v1785_v22  ;;  %v1800_v26 = vsel %vm855_vm1, %v3651_v23, 0.0 }
 0x50f   : > { %1801 = vadd.xlane.f32.xlu2 %v1800_v26  ;;  %v2572_v26 = vld [vmem:[%s3512_s14 + $0x18] sm:$0xff] }
 0x510   : > { %v1789_v28 = vadd.f32 %v1788_v27, %v1787_v25  ;;  %2017 = vmatpush.bf16.msra.mxu1 %v2572_v26 }
 0x512   : > { %v1791_v2 = vadd.f32 %v1789_v28, %v3525_v4 }
 0x514   : > { %v3658_v29 = vadd.f32 %v2715_v15, %v1791_v2 }
 0x516   : > { %v1803_v30 = vsel %vm855_vm1, %v3658_v29, 0.0 }
 0x517   : > { %1804 = vadd.xlane.f32.xlu0 %v1803_v30 }
 0x582   : > { %v1802_v31 = vpop.xlane.xlu2 %1801 }
 0x583   : > { %v1806_v32 = vmul.f32 %v1802_v31, %v3529_v12  ;;  %v2571_v31 = vld [vmem:[%s3512_s14 + $0x10] sm:$0xff] }
 0x584   : > { %2018 = vmatpush.bf16.msra.mxu1 %v2571_v31 }
 0x585   : > { %v1808_v33 = vsub.f32 %v3651_v23, %v1806_v32 }
 0x587   : > { %v1810_v34 = vmul.f32 %v1808_v33, %v1808_v33 }
 0x589   : > { %v1812_v35 = vsel %vm855_vm1, %v1810_v34, 0.0 }
 0x58a   : > { %1813 = vadd.xlane.f32.xlu1 %v1812_v35  ;;  %v1805_v36 = vpop.xlane.xlu0 %1804 }
 0x58b   : > { %v1807_v4 = vmul.f32 %v1805_v36, %v3529_v12 }
 0x58d   : > { %v1809_v37 = vsub.f32 %v3658_v29, %v1807_v4 }
 0x58f   : > { %v1811_v38 = vmul.f32 %v1809_v37, %v1809_v37 }
 0x591   : > { %v1815_v39 = vsel %vm855_vm1, %v1811_v38, 0.0  ;;  %v2570_v38 = vld [vmem:[%s3512_s14 + $0x8] sm:$0xff] }
 0x592   : > { %1816 = vadd.xlane.f32.xlu2 %v1815_v39  ;;  %2019 = vmatpush.bf16.msra.mxu1 %v2570_v38 }
 0x5fd   : > { %v1814_v41 = vpop.xlane.xlu1 %1813 }
 0x5fe   : > { %v1818_v42 = vmul.f32 %v1814_v41, %v3529_v12 }
 0x600   : > { %v1820_v43 = vadd.f32 1e-05, %v1818_v42 }
 0x602   : > { %2758 = vrsqrt.f32 %v1820_v43  ;;  %vm1828_vm11 = vweird.f32 %v1820_v43 }
 0x605   : > { %v1817_v45 = vpop.xlane.xlu2 %1816 }
 0x606   : > { %v1819_v46 = vmul.f32 %v1817_v45, %v3529_v12  ;;  %v2716_v12 = vld [vmem:[%s831_s6] ss:$0 sm:$0xff] }
 0x608   : > { %v2759_v47 = vpop.eup %2758  ;;  %v1821_v48 = vadd.f32 1e-05, %v1819_v46  ;;  %v2569_v46 = vld [vmem:[%s3512_s14] sm:$0xff] }
 0x609   : > { %v1823_v49 = vmul.f32 %v2759_v47, %v1820_v43  ;;  %vm1829_vm10 = vweird.f32 %v2759_v47  ;;  %2020 = vmatpush.bf16.msra.mxu1 %v2569_v46 }
 0x60a   : > { %2760 = vrsqrt.f32 %v1821_v48  ;;  %vm1830_vm12 = vmor %vm1828_vm11, %vm1829_vm10  ;;  %vm1838_vm14 = vweird.f32 %v1821_v48  ;;  %vm2009_vm11 = vcmask 523264  }
 0x60b   : > { %v1824_v50 = vmul.f32 %v2759_v47, %v1823_v49 }
 0x60d   : > { %v1825_v51 = vmul.f32 0.5, %v1824_v50 }
 0x60f   : > { %v1826_v52 = vsub.f32 1.5, %v1825_v51 }
 0x610   : > { %v2761_v53 = vpop.eup %2760 }
 0x611   : > { %v1827_v54 = vmul.f32 %v2759_v47, %v1826_v52  ;;  %v1833_v55 = vmul.f32 %v2761_v53, %v1821_v48  ;;  %vm1839_vm13 = vweird.f32 %v2761_v53 }
 0x612   : > { %vm1840_vm15 = vmor %vm1838_vm14, %vm1839_vm13 }
 0x613   : > { %v1834_v56 = vmul.f32 %v2761_v53, %v1833_v55  ;;  %v1831_v57 = vsel %vm1830_vm12, %v2759_v47, %v1827_v54 }
 0x614   : > { %v1842_v60 = vmul.f32 %v1831_v57, %v1808_v33 }
 0x615   : > { %v1835_v58 = vmul.f32 0.5, %v1834_v56 }
 0x616   : > { %v1847_v0 = vmul.f32 %v2716_v12, %v1842_v60 }
 0x617   : > { %v1836_v59 = vsub.f32 1.5, %v1835_v58 }
 0x618   : > { %v1852_v5 = vadd.f32 %v2717_v63, %v1847_v0 }
 0x619   : > { %v1837_v61 = vmul.f32 %v2761_v53, %v1836_v59 }
 0x61b   : > { %v1841_v62 = vsel %vm1840_vm15, %v2761_v53, %v1837_v61 }
 0x61c   : > { %v1843_v1 = vmul.f32 %v1841_v62, %v1809_v37 }
 0x61e   : > { %v1848_v3 = vmul.f32 %v2716_v12, %v1843_v1 }
 0x620   : > { %v1853_v6 = vadd.f32 %v2717_v63, %v1848_v3 }
 0x622   : > { %v1854_v7 = vpack.c.bf16 %v1853_v6, %v1852_v5 }
 0x624   : > { %2508 = vmatmul.msk.bf16.vlgmr.msra.gmra.mxu0 %vm855_vm1, %v1854_v7 }
 0x6a1   : > { %v1887_v9 = vpop.f32.mrf.mxu0 }
 0x6a2   : > { %v3688_v10 = vadd.f32 %v2718_v8, %v1887_v9 }
 0x6a4   : > { %v3691_v11 = vmul.f32 0.70710677, %v3688_v10 }
 0x6a6   : > { %v1896_v13 = vand.u32 2147483647, %v3691_v11  ;;  %vm1962_vm9 = vcmp.ge.f32.partialorder %v3691_v11, 0.0  ;;  %v2719_v11 = vld [vmem:[%s840_s2] ss:$0 sm:$0xff] }
 0x6a8   : > { %v1898_v14 = vmul.f32 0.3275911, %v1896_v13  ;;  %v1950_v36 = vsub.f32 0.0, %v1896_v13 }
 0x6a9   : > { %v1889_v15 = vpop.f32.mrf.mxu0 }
 0x6aa   : > { %v1900_v16 = vadd.f32 1.0, %v1898_v14  ;;  %v3694_v17 = vadd.f32 %v2718_v8, %v1889_v15  ;;  %v1952_v42 = vmul.f32 %v1950_v36, %v1896_v13 }
 0x6ac   : > { %2762 = vrcp.f32 %v1900_v16  ;;  %v3697_v18 = vmul.f32 0.70710677, %v3694_v17  ;;  %v1913_v27 = vand.u32 2147483648, %v1900_v16  ;;  %v1911_v2 = vand.u32 2147483647, %v1900_v16 }
 0x6ad   : > { %vm1907_vm2 = vweird.f32 %v1900_v16  ;;  %v1954_v50 = vmul.f32 1.442695, %v1952_v42 }
 0x6ae   : > { %v1897_v19 = vand.u32 2147483647, %v3697_v18  ;;  %v1914_v32 = vor.u32 1.1754944e-38, %v1913_v27  ;;  %vm1912_vm4 = vcmp.eq.f32.partialorder %v1911_v2, 8.507059e+37  ;;  %vm1963_vm10 = vcmp.ge.f32.partialorder %v3697_v18, 0.0 }
 0x6b0   : > { %v1899_v20 = vmul.f32 0.3275911, %v1897_v19  ;;  %v1951_v54 = vsub.f32 0.0, %v1897_v19 }
 0x6b2   : > { %v2763_v21 = vpop.eup %2762  ;;  %v1901_v24 = vadd.f32 1.0, %v1899_v20  ;;  %v1953_v59 = vmul.f32 %v1951_v54, %v1897_v19 }
 0x6b3   : > { %v1903_v22 = vmul.f32 %v2763_v21, %v1900_v16  ;;  %vm1908_vm0 = vweird.f32 %v2763_v21 }
 0x6b4   : > { %2764 = vrcp.f32 %v1901_v24  ;;  %vm1909_vm3 = vmor %vm1907_vm2, %vm1908_vm0  ;;  %v1928_v41 = vand.u32 2147483648, %v1901_v24  ;;  %v1926_v44 = vand.u32 2147483647, %v1901_v24  ;;  %vm1922_vm6 = vweird.f32 %v1901_v24 }
 0x6b5   : > { %v1904_v25 = vsub.f32 1.0, %v1903_v22  ;;  %2766 = vpow2.f32 %v1954_v50  ;;  %v1956_v63 = vmul.f32 1.442695, %v1953_v59 }
 0x6b6   : > { %v1929_v49 = vor.u32 1.1754944e-38, %v1928_v41  ;;  %vm1927_vm8 = vcmp.eq.f32.partialorder %v1926_v44, 8.507059e+37 }
 0x6b7   : > { %v1905_v28 = vmul.f32 %v2763_v21, %v1904_v25  ;;  %2768 = vpow2.f32 %v1956_v63  ;;  %v1893_v25 = vmul.f32 0.5, %v3694_v17 }
 0x6b9   : > { %v1906_v30 = vadd.f32 %v2763_v21, %v1905_v28 }
 0x6ba   : > { %v2765_v33 = vpop.eup %2764 }
 0x6bb   : > { %v1910_v34 = vsel %vm1909_vm3, %v2763_v21, %v1906_v30  ;;  %v1918_v4 = vmul.f32 %v2765_v33, %v1901_v24  ;;  %vm1923_vm5 = vweird.f32 %v2765_v33  ;;  %v2767_v0 = vpop.eup %2766  ;;  %v1892_v24 = vmul.f32 0.5, %v3688_v10 }
 0x6bc   : > { %v1915_v35 = vsel %vm1912_vm4, %v1914_v32, %v1910_v34  ;;  %vm1924_vm7 = vmor %vm1922_vm6, %vm1923_vm5 }
 0x6bd   : > { %v1932_v37 = vmul.f32 1.0614054, %v1915_v35  ;;  %v1919_v39 = vsub.f32 1.0, %v1918_v4  ;;  %v2769_v14 = vpop.eup %2768 }
 0x6bf   : > { %v1934_v40 = vadd.f32 -1.4531521, %v1932_v37  ;;  %v1920_v43 = vmul.f32 %v2765_v33, %v1919_v39 }
 0x6c1   : > { %v1936_v45 = vmul.f32 %v1934_v40, %v1915_v35  ;;  %v1921_v47 = vadd.f32 %v2765_v33, %v1920_v43 }
 0x6c3   : > { %v1938_v48 = vadd.f32 1.4214138, %v1936_v45  ;;  %v1925_v51 = vsel %vm1924_vm7, %v2765_v33, %v1921_v47 }
 0x6c4   : > { %v1930_v53 = vsel %vm1927_vm8, %v1929_v49, %v1925_v51 }
 0x6c5   : > { %v1940_v52 = vmul.f32 %v1938_v48, %v1915_v35  ;;  %v1933_v55 = vmul.f32 1.0614054, %v1930_v53 }
 0x6c7   : > { %v1942_v56 = vadd.f32 -0.28449672, %v1940_v52  ;;  %v1935_v57 = vadd.f32 -1.4531521, %v1933_v55 }
 0x6c9   : > { %v1944_v58 = vmul.f32 %v1942_v56, %v1915_v35  ;;  %v1937_v12 = vmul.f32 %v1935_v57, %v1930_v53 }
 0x6cb   : > { %v1946_v60 = vadd.f32 0.2548296, %v1944_v58  ;;  %v1939_v61 = vadd.f32 1.4214138, %v1937_v12 }
 0x6cd   : > { %v1948_v62 = vmul.f32 %v1946_v60, %v1915_v35  ;;  %v1941_v1 = vmul.f32 %v1939_v61, %v1930_v53 }
 0x6cf   : > { %v1958_v3 = vmul.f32 %v2767_v0, %v1948_v62  ;;  %v1943_v5 = vadd.f32 -0.28449672, %v1941_v1 }
 0x6d1   : > { %v1960_v6 = vsub.f32 1.0, %v1958_v3  ;;  %v1945_v7 = vmul.f32 %v1943_v5, %v1930_v53 }
 0x6d3   : > { %v1947_v8 = vadd.f32 0.2548296, %v1945_v7  ;;  %v1964_v9 = vsub.f32 0.0, %v1960_v6 }
 0x6d5   : > { %v1949_v13 = vmul.f32 %v1947_v8, %v1930_v53  ;;  %v1966_v16 = vsel %vm1962_vm9, %v1960_v6, %v1964_v9 }
 0x6d6   : > { %v1968_v21 = vadd.f32 1.0, %v1966_v16 }
 0x6d7   : > { %v1959_v15 = vmul.f32 %v2769_v14, %v1949_v13 }
 0x6d8   : > { %v1970_v27 = vmul.f32 %v1968_v21, %v1892_v24 }
 0x6d9   : > { %v1961_v19 = vsub.f32 1.0, %v1959_v15 }
 0x6db   : > { %v1965_v20 = vsub.f32 0.0, %v1961_v19 }
 0x6dd   : > { %v1967_v22 = vsel %vm1963_vm10, %v1961_v19, %v1965_v20 }
 0x6de   : > { %v1969_v26 = vadd.f32 1.0, %v1967_v22 }
 0x6e0   : > { %v1971_v28 = vmul.f32 %v1969_v26, %v1893_v25 }
 0x6e2   : > { %v1972_v2 = vpack.c.bf16 %v1971_v28, %v1970_v27 }
 0x6e4   : > { %2525 = vmatmul.msk.bf16.vlgmr.msra.gmra.mxu1 %vm2009_vm11, %v1972_v2 }
 0x761   : > { %v2022_v30 = vpop.f32.mrf.mxu1 }
 0x762   : > { %v2023_v31 = vadd.f32 %v2719_v11, %v2022_v30 }
 0x764   : > { %v2027_v18 = vadd.f32 %v2023_v31, %v3651_v23 }
 0x766   : > { %2029 = vst.msk [vmem:[#allocation2] sm:$0xff] %vm855_vm1, %v2027_v18 }
 0x769   : > { %v2024_v10 = vpop.f32.mrf.mxu1 }
 0x76a   : > { %v2025_v32 = vadd.f32 %v2719_v11, %v2024_v10  ;;  %2034 = sbr.rel (%p2526_p13) target bundleno = 1905 (0x771), region = 112 }
 0x76c   : > { %v2028_v17 = vadd.f32 %v2025_v32, %v3658_v29 }
 0x76e   : > { %2030 = vst.msk [vmem:[#allocation2 + $0x8] sm:$0xff] %vm855_vm1, %v2028_v17 }
 0x76f   : > { %2035 = vst.msk [vmem:[%s3516_s5] sm:$0xff] %vm855_vm1, %v2027_v18 }
 0x770   : > { %2036 = vst.msk [vmem:[%s3516_s5 + $0x8] sm:$0xff] %vm855_vm1, %v2028_v17 }
 0x771 PF: > { %s3892_s24 = sld [smem:[#allocation27_spill]]  ;;  %s2050_s16 = sshll.u32 %s3516_s5, 4  ;;  %s2051_s16 = int_to_ptr.vmem [resolvable:$true] %s2050_s16 }
 0x772   : > { %s3894_s4 = sld [smem:[#allocation53_spill]]  ;;  %s2038_s23 = scalar_lea.sflag [#allocation5], %s3444_s27 }
 0x777   : > { %s2573_s2 = sshll.u32 %s3892_s24, 4 }
 0x778   : > { %s2049_s30 = scalar_lea.hbm %s3894_s4, %s2573_s2  ;;  %s3000_s25 = scalar_lea.hbm %s3894_s4, 32 }
 0x779   : > { %s2052_s21 = sshll.u32 %s2049_s30, 4  ;;  %s2053_s21 = int_to_ptr.hbm [resolvable:$true] %s2052_s21 }
 0x77a   : > { %s2994_s9 = sshra.s32 %s2053_s21, 4  ;;  %s2995_s9 = int_to_ptr.hbm [resolvable:$true] %s2994_s9 }
 0x77b   : > { %s2996_s7 = scalar_lea.hbm %s2995_s9, 16  ;;  %p3001_p1 = scmp.lt.s32.totalorder %s2995_s9, %s3894_s4 }
 0x77c   : > { %p2997_p2 = scmp.ne.s32.totalorder %s2995_s9, %s2996_s7  ;;  %p3002_p0 = scmp.lt.s32.totalorder %s3000_s25, %s2996_s7 }
 0x77e   : > { %p2998_p4 = pnand %p2997_p2, %p3384_p12  ;;  %p3003_p8 = por %p3002_p0, %p3001_p1 }
 0x780   : > { %p2999_p6 = pneg %p2998_p4 }
 0x782   : > { %p3004_p9 = pnand %p3003_p8, %p2999_p6 }
 0x784   : > { %3007 = shalt.err (!%p3004_p9)
}
 0x785   : > { %s3121_s27 = smov 128   ;;  %s3122_s5 = smov 8  }
 0x786   : > { %2588 = dma.vmem_to_hbm [thread:$0]  (%p3384_p12), %s2051_s16, 256, %s2053_s21, %s2038_s23, %s3121_s27, %s3121_s27, %s3122_s5  }
 0x787 PF: > { %s3895_s10 = sld [smem:[#allocation30_spill]] }
 0x788   : > { %s3896_s20 = sld [smem:[#allocation23_spill]] }
 0x78d   : > { %p2617_p3 = scmp.ge.s32.totalorder %s3895_s10, 2 }
 0x78e   : > { %s2067_s26 = sand.u32 1, %s3896_s20  }
 0x78f   : > { %p2613_p11 = pnand %p2617_p3, %p3395_p5  ;;  %s2068_s11 = scalar_lea.sflag [#allocation5], %s2067_s26 }
 0x791   : > { %p2614_p7 = pneg %p2613_p11 }
 0x793   : > { %3069 = dma.done.wait (%p2614_p7), %s2068_s11, 256  }
 0x794   : > { %3071 = vsyncadd (%p2614_p7), %s2068_s11, 4294967040  ;;  %s39_s23 = sadd.s32 1, %s3895_s10   ;;  %s3898_s29 = sld [smem:[#allocation21_spill]] }
 0x795   : > { %p36_p10 = scmp.ge.s32.totalorder %s39_s23, 6   ;;  %s3899_s30 = sld [smem:[#allocation22_spill]] }
 0x796   : > { %s3900_s15 = sld [smem:[#allocation32_spill]] }
 0x797   : > { %s3901_s16 = sld [smem:[#allocation24_spill]] }
 0x798   : > { %s3902_s17 = sld [smem:[#allocation25_spill]] }
 0x799   : > { %s3903_s18 = sld [smem:[#allocation36_spill]]  ;;  %38 = sbr.rel (!%p36_p10) target bundleno = 31 (0x1f), region = 222 }
 0x79a   : > { %s3904_s19 = sld [smem:[#allocation28_spill]] }
 0x79b   : > { %s3905_s20 = sld [smem:[#allocation29_spill]] }
 0x79c   : > { %s3906_s21 = sld [smem:[#allocation31_spill]] }
 0x79d   : > { %s3907_s22 = sld [smem:[#allocation34_spill]] }
 0x79e   :  { %2074 = vsyncpa [#allocation4], 1 }
 0x79f   :  { %2076 = vsyncpa [#allocation4 + $0x1], 1 }
 0x7a0   :  { %2077 = vsyncpa [#allocation7], 1 }
 0x7a1   :  { %2079 = vsyncpa [#allocation7 + $0x1], 1 }
 0x7a2   :  { %2080 = vsyncpa [#allocation10], 1 }
 0x7a3   :  { %2082 = vsyncpa [#allocation10 + $0x1], 1 }
 0x7a4   :  { %2083 = vsyncpa [#allocation13], 1 }
 0x7a5   :  { %2085 = vsyncpa [#allocation13 + $0x1], 1 }
 0x7a6   :  { %2086 = vsyncpa [#allocation5], 1 }
 0x7a7   :  { %2088 = vsyncpa [#allocation5 + $0x1], 1 }

</bundles_post_ra>
